<compile_context>
chip_gen: v5e
topology: v5e:2x2
jax: 0.10.0
libtpu: 0.0.40
codegen_flags: <defaults>
</compile_context>

<pallas_src>
import jax
import jax.numpy as jnp
from jax import lax
from jax.experimental import pallas as pl
from jax.experimental.pallas import tpu as pltpu


# ----------------------------------------------------------------------------- rotary tables
def build_rotary_tables(n, heads, dim_head, theta=10000.0):
    """Lane-wide rotary tables so that, for t of shape (N, H):

        t_rot = t * COS + roll_left(t) * SIN_E + roll_right(t) * SIN_O

    where roll_left/right are +/-1 circular lane shifts.  Matches
    rotary_embedding_torch.RotaryEmbedding(dim=dim_head // 2).rotate_queries_or_keys():
    only the first dim_head//2 channels of each head are rotated (interleaved pairs),
    remaining channels pass through (COS=1, SIN_E=SIN_O=0 there).
    """
    rot_dim = dim_head // 2
    assert rot_dim % 2 == 0, "dim_head // 2 must be even for interleaved rotary pairs"
    pass_dim = dim_head - rot_dim

    inv_freq = 1.0 / (theta ** (jnp.arange(0, rot_dim, 2, dtype=jnp.float32) / rot_dim))
    freqs = jnp.arange(n, dtype=jnp.float32)[:, None] * inv_freq[None, :]   # (n, rot_dim//2)
    freqs = jnp.repeat(freqs, 2, axis=-1)                                   # (n, rot_dim)
    cosf, sinf = jnp.cos(freqs), jnp.sin(freqs)

    even = (jnp.arange(rot_dim) % 2) == 0                                   # (rot_dim,)
    ones_p = jnp.ones((n, pass_dim), jnp.float32)
    zeros_p = jnp.zeros((n, pass_dim), jnp.float32)

    # lane 2i   gets -sin * t[2i+1]  (left-neighbor via roll_left)
    # lane 2i+1 gets +sin * t[2i]    (right-neighbor via roll_right)
    cos_h = jnp.concatenate([cosf, ones_p], axis=-1)
    sin_e_h = jnp.concatenate([jnp.where(even[None, :], -sinf, 0.0), zeros_p], axis=-1)
    sin_o_h = jnp.concatenate([jnp.where(even[None, :], 0.0, sinf), zeros_p], axis=-1)

    cos = jnp.tile(cos_h, (1, heads))        # (n, H)
    sin_e = jnp.tile(sin_e_h, (1, heads))    # (n, H)
    sin_o = jnp.tile(sin_o_h, (1, heads))    # (n, H)
    return cos, sin_e, sin_o


# ----------------------------------------------------------------------------- kernel
def _make_kernel(*, heads, dim_head, cond_dim, scale, compute_dtype):
    H = heads * dim_head
    approx_recip = jnp.dtype(compute_dtype) != jnp.dtype(jnp.float32)

    def kernel(x_ref, cond_ref, cos_ref, sin_e_ref, sin_o_ref,
               wqkv_ref, wqv_ref, wk_ref, wmid_ref, bmid_ref,
               wout_ref, bout_ref, o_ref, attn_ref):
        cos = cos_ref[...]        # (N, H) f32
        sin_e = sin_e_ref[...]    # (N, H) f32
        sin_o = sin_o_ref[...]    # (N, H) f32

        def rotary(t_f32):
            # t_f32: (N, H) f32.  Interleaved-pair rotation via +/-1 lane rolls (XLU),
            # signs folded into the sin tables.  Stays in f32.
            rl = pltpu.roll(t_f32, H - 1, 1)   # rl[:, i] = t[:, i+1]   (shift H-1 == -1)
            rr = pltpu.roll(t_f32, 1, 1)       # rr[:, i] = t[:, i-1]
            return t_f32 * cos + rl * sin_e + rr * sin_o

        def attend(q_c, k_c, v_c):
            # q_c/k_c/v_c: (N, H) compute_dtype, scale already folded into q.
            # Writes the (unnormalized @ v, then reciprocal-normalized) result per head
            # into the lane-aligned f32 scratch slab attn_ref (no concatenate).
            for h in range(heads):
                sl = slice(h * dim_head, (h + 1) * dim_head)
                sim = lax.dot_general(
                    q_c[:, sl], k_c[:, sl], (((1,), (1,)), ((), ())),
                    preferred_element_type=jnp.float32)               # (N, N) f32
                m = jnp.max(sim, axis=-1, keepdims=True)
                p = jnp.exp(sim - m)
                l = jnp.sum(p, axis=-1, keepdims=True)
                o_h = jnp.dot(p.astype(compute_dtype), v_c[:, sl],
                              preferred_element_type=jnp.float32)      # (N, dim_head) f32
                attn_ref[:, sl] = o_h * pl.reciprocal(l, approx=approx_recip)

        # ---- self-attention stage -------------------------------------------------------
        x_c = x_ref[...].astype(compute_dtype)                          # (N, dim)
        qkv = jnp.dot(x_c, wqkv_ref[...],
                      preferred_element_type=jnp.float32)               # (N, 3H) f32
        q = (rotary(qkv[:, 0 * H:1 * H]) * scale).astype(compute_dtype)
        k = rotary(qkv[:, 1 * H:2 * H]).astype(compute_dtype)
        v = qkv[:, 2 * H:3 * H].astype(compute_dtype)
        attend(q, k, v)                                                 # -> attn_ref (N, H)

        a_c = attn_ref[...].astype(compute_dtype)
        mid = jnp.dot(a_c, wmid_ref[...],
                      preferred_element_type=jnp.float32) + bmid_ref[...]   # (N, dim) f32

        # ---- cross-attention stage ------------------------------------------------------
        qv = jnp.dot(mid.astype(compute_dtype), wqv_ref[...],
                     preferred_element_type=jnp.float32)                # (N, 2H) f32
        q2 = (rotary(qv[:, 0 * H:1 * H]) * scale).astype(compute_dtype)
        v2 = qv[:, 1 * H:2 * H].astype(compute_dtype)
        if cond_dim == 1:
            # 1x1 conv from a single conditioning channel == broadcast outer product.
            k2_raw = cond_ref[...].astype(jnp.float32) * wk_ref[...].astype(jnp.float32)
        else:
            k2_raw = jnp.dot(cond_ref[...].astype(compute_dtype), wk_ref[...],
                             preferred_element_type=jnp.float32)
        k2 = rotary(k2_raw).astype(compute_dtype)
        attend(q2, k2, v2)                                              # -> attn_ref (N, H)

        # ---- output projection, written lane-dense as (dim, N) --------------------------
        o_c = attn_ref[...].astype(compute_dtype)
        # out^T[c, n] = sum_h Wout^T[c, h] * o[n, h]  (transpose_rhs matmul on the MXU);
        # produces the native NCL layout directly -> unmasked stores, no wrapper transpose.
        out_t = lax.dot_general(wout_ref[...], o_c, (((1,), (1,)), ((), ())),
                                preferred_element_type=jnp.float32) + bout_ref[...]
        o_ref[...] = out_t.astype(o_ref.dtype)                          # (dim, N)

    return kernel


# ----------------------------------------------------------------------------- wrapper
def hybrid_attention(x, cond, params, *, heads=4, dim_head=32,
                     compute_dtype=jnp.bfloat16, rotary_theta=10000.0):
    """x: (B, dim, N), cond: (B, cond_dim, N) -- NCL layout, same as the PyTorch module.

    compute_dtype: matmul-operand dtype (f32 accumulation, f32 softmax/rotary always).
    bf16 is the production default; f32 is a debug/numerics-check path.
    """
    w_qkv, w_qv, w_k, w_mid, b_mid, w_out, b_out = params
    B, dim, N = x.shape
    Bc, cond_dim, Nc = cond.shape
    assert Bc == B and Nc == N, "cond must share batch and length with x"
    H = heads * dim_head
    scale = dim_head ** -0.5

    cos, sin_e, sin_o = build_rotary_tables(N, heads, dim_head, rotary_theta)

    # Pre-cast matmul weights once (review item: no per-grid-step casts, fewer DMA bytes).
    w_qkv_c = w_qkv.astype(compute_dtype)            # (dim, 3H)
    w_qv_c = w_qv.astype(compute_dtype)              # (dim, 2H)
    w_k_c = w_k.astype(compute_dtype)                # (cond_dim, H)
    w_mid_c = w_mid.astype(compute_dtype)            # (H, dim)
    w_out_t = jnp.transpose(w_out).astype(compute_dtype)   # (dim, H) for transpose_rhs matmul
    b_mid_f = b_mid.astype(jnp.float32)              # (1, dim)
    b_out_c = jnp.transpose(b_out).astype(jnp.float32)     # (dim, 1)

    # Only the small dim/cond_dim-channel inputs cross this boundary channels-last; the
    # output stays in native NCL (produced lane-dense by the kernel).
    x_nlc = jnp.transpose(x, (0, 2, 1))              # (B, N, dim)
    cond_nlc = jnp.transpose(cond, (0, 2, 1))        # (B, N, cond_dim)

    kernel = _make_kernel(heads=heads, dim_head=dim_head, cond_dim=cond_dim,
                          scale=scale, compute_dtype=compute_dtype)

    # ---- VMEM budget (review item: explicit vmem_limit_bytes from the real footprint) ----
    cbytes = jnp.dtype(compute_dtype).itemsize
    f32b = 4
    w_bytes = cbytes * (w_qkv.size + w_qv.size + w_k.size + w_mid.size + w_out.size) \
        + f32b * (b_mid.size + b_out.size)
    tab_bytes = f32b * 3 * N * H
    io_bytes = 2 * (x.dtype.itemsize * N * dim
                    + cond.dtype.itemsize * N * cond_dim
                    + x.dtype.itemsize * dim * N)                    # double-buffered blocks
    inter_bytes = (f32b * N * 3 * H                                  # qkv / qv slabs
                   + (f32b + cbytes) * 3 * N * H                     # q,k,v f32 + compute copies
                   + 2 * f32b * N * N                                # live per-head sims (margin)
                   + f32b * N * H)                                   # attention scratch slab
    vmem_limit = int(min(64 << 20,
                         max(32 << 20,
                             2 * (w_bytes + tab_bytes + io_bytes + inter_bytes))))

    # ---- advisory cost estimate -----------------------------------------------------------
    flops_proj = 2 * N * (dim * 3 * H + H * dim + dim * 2 * H + cond_dim * H + H * dim)
    flops_rot = 4 * 6 * N * H                         # 4 rotary applications, VPU/XLU
    flops_attn = 2 * heads * (2 * 2 * N * N * dim_head)
    cost = pl.CostEstimate(
        flops=int(B * (flops_proj + flops_rot + flops_attn)),
        transcendentals=int(B * 2 * heads * N * N),
        bytes_accessed=int(x.dtype.itemsize * (x.size + B * dim * N)
                           + cond.dtype.itemsize * cond.size
                           + w_bytes + tab_bytes))

    const2d = lambda b: (0, 0)
    out = pl.pallas_call(
        kernel,
        out_shape=jax.ShapeDtypeStruct((B, dim, N), x.dtype),
        grid_spec=pltpu.PrefetchScalarGridSpec(
            num_scalar_prefetch=0,
            grid=(B,),
            in_specs=[
                pl.BlockSpec((None, N, dim), lambda b: (b, 0, 0)),        # x (channels-last)
                pl.BlockSpec((None, N, cond_dim), lambda b: (b, 0, 0)),   # cond
                pl.BlockSpec((N, H), const2d),                            # rotary cos
                pl.BlockSpec((N, H), const2d),                            # rotary sin (even)
                pl.BlockSpec((N, H), const2d),                            # rotary sin (odd)
                pl.BlockSpec((dim, 3 * H), const2d),                      # w_qkv
                pl.BlockSpec((dim, 2 * H), const2d),                      # w_qv
                pl.BlockSpec((cond_dim, H), const2d),                     # w_k
                pl.BlockSpec((H, dim), const2d),                          # w_mid
                pl.BlockSpec((1, dim), const2d),                          # b_mid
                pl.BlockSpec((dim, H), const2d),                          # w_out^T
                pl.BlockSpec((dim, 1), const2d),                          # b_out (column)
            ],
            out_specs=pl.BlockSpec((None, dim, N), lambda b: (b, 0, 0)),  # native NCL output
            scratch_shapes=[pltpu.VMEM((N, H), jnp.float32)],             # attention out slab
        ),
        compiler_params=pltpu.CompilerParams(
            dimension_semantics=("parallel",),
            vmem_limit_bytes=vmem_limit,
        ),
        cost_estimate=cost,
    )(x_nlc, cond_nlc, cos, sin_e, sin_o,
      w_qkv_c, w_qv_c, w_k_c, w_mid_c, b_mid_f, w_out_t, b_out_c)

    return out                                       # already (B, dim, N)


# ----------------------------------------------------------------------------- params
def init_params(key, dim, heads, dim_head, cond_dim, dtype=jnp.float32):
    """Synthetic parameters matching the PyTorch module's 1x1-conv shapes.

    torch: to_qkv.weight (3H,dim,1), to_qv.weight (2H,dim,1), to_k.weight (H,cond_dim,1),
           to_mid.weight (dim,H,1)+bias, to_out.weight (dim,H,1)+bias.
    Stored here transposed for right-multiplication: (in, out) matrices.
    """
    H = heads * dim_head
    ks = jax.random.split(key, 7)

    def u(k, shape, fan_in):
        b = 1.0 / (fan_in ** 0.5)
        return jax.random.uniform(k, shape, dtype, -b, b)

    w_qkv = u(ks[0], (dim, 3 * H), dim)
    w_qv = u(ks[1], (dim, 2 * H), dim)
    w_k = u(ks[2], (cond_dim, H), cond_dim)
    w_mid = u(ks[3], (H, dim), H)
    b_mid = u(ks[4], (1, dim), H)
    w_out = u(ks[5], (H, dim), H)
    b_out = u(ks[6], (1, dim), H)
    return (w_qkv, w_qv, w_k, w_mid, b_mid, w_out, b_out)


# ----------------------------------------------------------------------------- reference
def _rotary_ref(t, theta=10000.0):
    # t: (B, heads, N, dim_head); rotate the first dim_head//2 channels, interleaved pairs.
    dim_head = t.shape[-1]
    n = t.shape[-2]
    rot_dim = dim_head // 2
    inv_freq = 1.0 / (theta ** (jnp.arange(0, rot_dim, 2, dtype=jnp.float32) / rot_dim))
    freqs = jnp.arange(n, dtype=jnp.float32)[:, None] * inv_freq[None, :]
    freqs = jnp.repeat(freqs, 2, axis=-1)                  # (n, rot_dim)
    cos, sin = jnp.cos(freqs), jnp.sin(freqs)
    t_rot, t_pass = t[..., :rot_dim], t[..., rot_dim:]
    t1 = t_rot[..., 0::2]
    t2 = t_rot[..., 1::2]
    t_half = jnp.stack([-t2, t1], axis=-1).reshape(t_rot.shape)
    t_rot = t_rot * cos + t_half * sin
    return jnp.concatenate([t_rot, t_pass], axis=-1)


def hybrid_attention_ref(x, cond, params, *, heads, dim_head):
    """Pure-JAX mirror of the PyTorch forward, for correctness checking."""
    w_qkv, w_qv, w_k, w_mid, b_mid, w_out, b_out = params
    B, dim, n = x.shape
    H = heads * dim_head
    scale = dim_head ** -0.5

    def split_heads(t):   # (B, n, H) -> (B, heads, n, dim_head)
        return jnp.transpose(t.reshape(B, n, heads, dim_head), (0, 2, 1, 3))

    def merge_heads(t):   # (B, heads, n, dim_head) -> (B, n, H)
        return jnp.transpose(t, (0, 2, 1, 3)).reshape(B, n, H)

    def attend(q, k, v):
        sim = jnp.einsum('bhid,bhjd->bhij', q, k) * scale
        attn = jax.nn.softmax(sim, axis=-1)
        return jnp.einsum('bhij,bhjd->bhid', attn, v)

    x_t = jnp.transpose(x, (0, 2, 1))
    cond_t = jnp.transpose(cond, (0, 2, 1))

    qkv = x_t @ w_qkv
    q, k, v = (split_heads(t) for t in jnp.split(qkv, 3, axis=-1))
    q, k = _rotary_ref(q), _rotary_ref(k)
    a = merge_heads(attend(q, k, v))

    mid = a @ w_mid + b_mid
    qv = mid @ w_qv
    q2, v2 = (split_heads(t) for t in jnp.split(qv, 2, axis=-1))
    k2 = split_heads(cond_t @ w_k)
    q2, k2 = _rotary_ref(q2), _rotary_ref(k2)
    o = merge_heads(attend(q2, k2, v2))

    out = o @ w_out + b_out
    return jnp.transpose(out, (0, 2, 1))


# ----------------------------------------------------------------------------- demo
if __name__ == "__main__":
    B, dim, N = 2, 8, 16
    heads, dim_head, cond_dim = 4, 32, 1        # hidden = 128 (lane-dense)

    key = jax.random.PRNGKey(0)
    kx, kc, kp = jax.random.split(key, 3)
    x = jax.random.normal(kx, (B, dim, N), jnp.float32)
    cond = jax.random.normal(kc, (B, cond_dim, N), jnp.float32)
    params = init_params(kp, dim, heads, dim_head, cond_dim)

    y_ref = hybrid_attention_ref(x, cond, params, heads=heads, dim_head=dim_head)

    # f32 operands: debug / numerics-check path (exact reciprocal, f32 matmul operands).
    y32 = hybrid_attention(x, cond, params, heads=heads, dim_head=dim_head,
                           compute_dtype=jnp.float32)
    y32 = jax.block_until_ready(y32)
    assert y32.shape == (B, dim, N)
    err32 = float(jnp.max(jnp.abs(y32 - y_ref)))
    assert err32 < 5e-4, f"f32 max abs err {err32}"

    # bf16 matmul operands (f32 accumulation, f32 rotary/softmax stats): production default.
    ybf = hybrid_attention(x, cond, params, heads=heads, dim_head=dim_head)
    ybf = jax.block_until_ready(ybf)
    assert ybf.shape == (B, dim, N)
    assert jnp.all(jnp.isfinite(ybf))
    errbf = float(jnp.max(jnp.abs(ybf.astype(jnp.float32) - y_ref)))
    assert errbf < 0.1, f"bf16 max abs err {errbf}"

    print("KERNEL_OK")
</pallas_src>

<mosaic_0001>
module attributes {stable_mosaic.version = 11 : i64} {
  func.func @kernel(%arg0: i32, %arg1: memref<1x16x8xf32, #tpu.memory_space<vmem>>, %arg2: memref<1x16x1xf32, #tpu.memory_space<vmem>>, %arg3: memref<16x128xf32, #tpu.memory_space<vmem>>, %arg4: memref<16x128xf32, #tpu.memory_space<vmem>>, %arg5: memref<16x128xf32, #tpu.memory_space<vmem>>, %arg6: memref<8x384xf32, #tpu.memory_space<vmem>>, %arg7: memref<8x256xf32, #tpu.memory_space<vmem>>, %arg8: memref<1x128xf32, #tpu.memory_space<vmem>>, %arg9: memref<128x8xf32, #tpu.memory_space<vmem>>, %arg10: memref<1x8xf32, #tpu.memory_space<vmem>>, %arg11: memref<8x128xf32, #tpu.memory_space<vmem>>, %arg12: memref<8x1xf32, #tpu.memory_space<vmem>>, %arg13: memref<1x8x16xf32, #tpu.memory_space<vmem>>, %arg14: memref<16x128xf32, #tpu.memory_space<vmem>>) attributes {dimension_semantics = [#tpu.dimension_semantics<parallel>], iteration_bounds = array<i64: 2>, scalar_prefetch = 0 : i64, scratch_operands = 1 : i64, tpu.core_type = #tpu.core_type<tc>, window_params = [{transform_indices = @transform_0, window_bounds = array<i64: 1, 16, 8>}, {transform_indices = @transform_1, window_bounds = array<i64: 1, 16, 1>}, {pipeline_mode = #tpu.pipeline_mode<synchronous>, transform_indices = @transform_2, window_bounds = array<i64: 16, 128>}, {pipeline_mode = #tpu.pipeline_mode<synchronous>, transform_indices = @transform_3, window_bounds = array<i64: 16, 128>}, {pipeline_mode = #tpu.pipeline_mode<synchronous>, transform_indices = @transform_4, window_bounds = array<i64: 16, 128>}, {pipeline_mode = #tpu.pipeline_mode<synchronous>, transform_indices = @transform_5, window_bounds = array<i64: 8, 384>}, {pipeline_mode = #tpu.pipeline_mode<synchronous>, transform_indices = @transform_6, window_bounds = array<i64: 8, 256>}, {pipeline_mode = #tpu.pipeline_mode<synchronous>, transform_indices = @transform_7, window_bounds = array<i64: 1, 128>}, {pipeline_mode = #tpu.pipeline_mode<synchronous>, transform_indices = @transform_8, window_bounds = array<i64: 128, 8>}, {pipeline_mode = #tpu.pipeline_mode<synchronous>, transform_indices = @transform_9, window_bounds = array<i64: 1, 8>}, {pipeline_mode = #tpu.pipeline_mode<synchronous>, transform_indices = @transform_10, window_bounds = array<i64: 8, 128>}, {pipeline_mode = #tpu.pipeline_mode<synchronous>, transform_indices = @transform_11, window_bounds = array<i64: 8, 1>}, {transform_indices = @transform_12, window_bounds = array<i64: 1, 8, 16>}]} {
    %c0 = arith.constant 0 : index
    %c0_0 = arith.constant 0 : index
    %0 = vector.load %arg3[%c0, %c0_0] : memref<16x128xf32, #tpu.memory_space<vmem>>, vector<16x128xf32>
    %c0_1 = arith.constant 0 : index
    %c0_2 = arith.constant 0 : index
    %1 = vector.load %arg4[%c0_1, %c0_2] : memref<16x128xf32, #tpu.memory_space<vmem>>, vector<16x128xf32>
    %c0_3 = arith.constant 0 : index
    %c0_4 = arith.constant 0 : index
    %2 = vector.load %arg5[%c0_3, %c0_4] : memref<16x128xf32, #tpu.memory_space<vmem>>, vector<16x128xf32>
    %c0_5 = arith.constant 0 : index
    %c0_6 = arith.constant 0 : index
    %c0_7 = arith.constant 0 : index
    %3 = vector.load %arg1[%c0_5, %c0_6, %c0_7] : memref<1x16x8xf32, #tpu.memory_space<vmem>>, vector<1x16x8xf32>
    %4 = vector.shape_cast %3 : vector<1x16x8xf32> to vector<16x8xf32>
    %c0_8 = arith.constant 0 : index
    %c0_9 = arith.constant 0 : index
    %5 = vector.load %arg6[%c0_8, %c0_9] : memref<8x384xf32, #tpu.memory_space<vmem>>, vector<8x384xf32>
    %cst = arith.constant dense<0.000000e+00> : vector<16x384xf32>
    %6 = tpu.matmul %4, %5, %cst {dimension_numbers = #tpu.dot_dimension_numbers<[1], [0], [0], [1], [0, 0, 1, 1], [], []>} : vector<16x8xf32>, vector<8x384xf32>, vector<16x384xf32> -> vector<16x384xf32>
    %7 = vector.extract_strided_slice %6 {offsets = [0, 0], sizes = [16, 128], strides = [1, 1]} : vector<16x384xf32> to vector<16x128xf32>
    %c127_i32 = arith.constant 127 : i32
    %8 = tpu.dynamic_rotate %7 by %c127_i32 dim 1 : vector<16x128xf32>, i32 -> vector<16x128xf32>
    %c1_i32 = arith.constant 1 : i32
    %9 = tpu.dynamic_rotate %7 by %c1_i32 dim 1 : vector<16x128xf32>, i32 -> vector<16x128xf32>
    %10 = arith.mulf %7, %0 : vector<16x128xf32>
    %11 = arith.mulf %8, %1 : vector<16x128xf32>
    %12 = arith.addf %10, %11 : vector<16x128xf32>
    %13 = arith.mulf %9, %2 : vector<16x128xf32>
    %14 = arith.addf %12, %13 : vector<16x128xf32>
    %cst_10 = arith.constant 0.176776692 : f32
    %15 = vector.broadcast %cst_10 : f32 to vector<16x128xf32>
    %16 = arith.mulf %14, %15 : vector<16x128xf32>
    %17 = vector.extract_strided_slice %6 {offsets = [0, 128], sizes = [16, 128], strides = [1, 1]} : vector<16x384xf32> to vector<16x128xf32>
    %c127_i32_11 = arith.constant 127 : i32
    %18 = tpu.dynamic_rotate %17 by %c127_i32_11 dim 1 : vector<16x128xf32>, i32 -> vector<16x128xf32>
    %c1_i32_12 = arith.constant 1 : i32
    %19 = tpu.dynamic_rotate %17 by %c1_i32_12 dim 1 : vector<16x128xf32>, i32 -> vector<16x128xf32>
    %20 = arith.mulf %17, %0 : vector<16x128xf32>
    %21 = arith.mulf %18, %1 : vector<16x128xf32>
    %22 = arith.addf %20, %21 : vector<16x128xf32>
    %23 = arith.mulf %19, %2 : vector<16x128xf32>
    %24 = arith.addf %22, %23 : vector<16x128xf32>
    %25 = vector.extract_strided_slice %6 {offsets = [0, 256], sizes = [16, 128], strides = [1, 1]} : vector<16x384xf32> to vector<16x128xf32>
    %26 = vector.extract_strided_slice %16 {offsets = [0, 0], sizes = [16, 32], strides = [1, 1]} : vector<16x128xf32> to vector<16x32xf32>
    %27 = vector.extract_strided_slice %24 {offsets = [0, 0], sizes = [16, 32], strides = [1, 1]} : vector<16x128xf32> to vector<16x32xf32>
    %cst_13 = arith.constant dense<0.000000e+00> : vector<16x16xf32>
    %28 = tpu.matmul %26, %27, %cst_13 {dimension_numbers = #tpu.dot_dimension_numbers<[1], [1], [0], [0], [0, 0, 1, 0], [], []>} : vector<16x32xf32>, vector<16x32xf32>, vector<16x16xf32> -> vector<16x16xf32>
    %cst_14 = arith.constant dense<0xFF800000> : vector<16xf32>
    %29 = vector.multi_reduction <maximumf>, %28, %cst_14 [1] : vector<16x16xf32> to vector<16xf32>
    %30 = vector.shape_cast %29 : vector<16xf32> to vector<16x1xf32>
    %31 = vector.broadcast %30 : vector<16x1xf32> to vector<16x16xf32>
    %32 = arith.subf %28, %31 : vector<16x16xf32>
    %33 = math.exp %32 : vector<16x16xf32>
    %cst_15 = arith.constant dense<0.000000e+00> : vector<16xf32>
    %34 = vector.multi_reduction <add>, %33, %cst_15 [1] : vector<16x16xf32> to vector<16xf32>
    %35 = vector.shape_cast %34 : vector<16xf32> to vector<16x1xf32>
    %36 = vector.extract_strided_slice %25 {offsets = [0, 0], sizes = [16, 32], strides = [1, 1]} : vector<16x128xf32> to vector<16x32xf32>
    %cst_16 = arith.constant dense<0.000000e+00> : vector<16x32xf32>
    %37 = tpu.matmul %33, %36, %cst_16 {dimension_numbers = #tpu.dot_dimension_numbers<[1], [0], [0], [1], [0, 0, 1, 1], [], []>} : vector<16x16xf32>, vector<16x32xf32>, vector<16x32xf32> -> vector<16x32xf32>
    %38 = tpu.reciprocal %35 : vector<16x1xf32> -> vector<16x1xf32>
    %39 = vector.broadcast %38 : vector<16x1xf32> to vector<16x32xf32>
    %40 = arith.mulf %37, %39 : vector<16x32xf32>
    %c0_17 = arith.constant 0 : index
    %c0_18 = arith.constant 0 : index
    %41 = vector.load %arg14[%c0_17, %c0_18] : memref<16x128xf32, #tpu.memory_space<vmem>>, vector<16x32xf32>
    tpu.vector_store %arg14[%c0_17, %c0_18], %40 {strides = array<i32>} : memref<16x128xf32, #tpu.memory_space<vmem>>, vector<16x32xf32>,
    %42 = vector.extract_strided_slice %16 {offsets = [0, 32], sizes = [16, 32], strides = [1, 1]} : vector<16x128xf32> to vector<16x32xf32>
    %43 = vector.extract_strided_slice %24 {offsets = [0, 32], sizes = [16, 32], strides = [1, 1]} : vector<16x128xf32> to vector<16x32xf32>
    %cst_19 = arith.constant dense<0.000000e+00> : vector<16x16xf32>
    %44 = tpu.matmul %42, %43, %cst_19 {dimension_numbers = #tpu.dot_dimension_numbers<[1], [1], [0], [0], [0, 0, 1, 0], [], []>} : vector<16x32xf32>, vector<16x32xf32>, vector<16x16xf32> -> vector<16x16xf32>
    %cst_20 = arith.constant dense<0xFF800000> : vector<16xf32>
    %45 = vector.multi_reduction <maximumf>, %44, %cst_20 [1] : vector<16x16xf32> to vector<16xf32>
    %46 = vector.shape_cast %45 : vector<16xf32> to vector<16x1xf32>
    %47 = vector.broadcast %46 : vector<16x1xf32> to vector<16x16xf32>
    %48 = arith.subf %44, %47 : vector<16x16xf32>
    %49 = math.exp %48 : vector<16x16xf32>
    %cst_21 = arith.constant dense<0.000000e+00> : vector<16xf32>
    %50 = vector.multi_reduction <add>, %49, %cst_21 [1] : vector<16x16xf32> to vector<16xf32>
    %51 = vector.shape_cast %50 : vector<16xf32> to vector<16x1xf32>
    %52 = vector.extract_strided_slice %25 {offsets = [0, 32], sizes = [16, 32], strides = [1, 1]} : vector<16x128xf32> to vector<16x32xf32>
    %cst_22 = arith.constant dense<0.000000e+00> : vector<16x32xf32>
    %53 = tpu.matmul %49, %52, %cst_22 {dimension_numbers = #tpu.dot_dimension_numbers<[1], [0], [0], [1], [0, 0, 1, 1], [], []>} : vector<16x16xf32>, vector<16x32xf32>, vector<16x32xf32> -> vector<16x32xf32>
    %54 = tpu.reciprocal %51 : vector<16x1xf32> -> vector<16x1xf32>
    %55 = vector.broadcast %54 : vector<16x1xf32> to vector<16x32xf32>
    %56 = arith.mulf %53, %55 : vector<16x32xf32>
    %c0_23 = arith.constant 0 : index
    %c32 = arith.constant 32 : index
    %57 = vector.load %arg14[%c0_23, %c32] : memref<16x128xf32, #tpu.memory_space<vmem>>, vector<16x32xf32>
    tpu.vector_store %arg14[%c0_23, %c32], %56 {strides = array<i32>} : memref<16x128xf32, #tpu.memory_space<vmem>>, vector<16x32xf32>,
    %58 = vector.extract_strided_slice %16 {offsets = [0, 64], sizes = [16, 32], strides = [1, 1]} : vector<16x128xf32> to vector<16x32xf32>
    %59 = vector.extract_strided_slice %24 {offsets = [0, 64], sizes = [16, 32], strides = [1, 1]} : vector<16x128xf32> to vector<16x32xf32>
    %cst_24 = arith.constant dense<0.000000e+00> : vector<16x16xf32>
    %60 = tpu.matmul %58, %59, %cst_24 {dimension_numbers = #tpu.dot_dimension_numbers<[1], [1], [0], [0], [0, 0, 1, 0], [], []>} : vector<16x32xf32>, vector<16x32xf32>, vector<16x16xf32> -> vector<16x16xf32>
    %cst_25 = arith.constant dense<0xFF800000> : vector<16xf32>
    %61 = vector.multi_reduction <maximumf>, %60, %cst_25 [1] : vector<16x16xf32> to vector<16xf32>
    %62 = vector.shape_cast %61 : vector<16xf32> to vector<16x1xf32>
    %63 = vector.broadcast %62 : vector<16x1xf32> to vector<16x16xf32>
    %64 = arith.subf %60, %63 : vector<16x16xf32>
    %65 = math.exp %64 : vector<16x16xf32>
    %cst_26 = arith.constant dense<0.000000e+00> : vector<16xf32>
    %66 = vector.multi_reduction <add>, %65, %cst_26 [1] : vector<16x16xf32> to vector<16xf32>
    %67 = vector.shape_cast %66 : vector<16xf32> to vector<16x1xf32>
    %68 = vector.extract_strided_slice %25 {offsets = [0, 64], sizes = [16, 32], strides = [1, 1]} : vector<16x128xf32> to vector<16x32xf32>
    %cst_27 = arith.constant dense<0.000000e+00> : vector<16x32xf32>
    %69 = tpu.matmul %65, %68, %cst_27 {dimension_numbers = #tpu.dot_dimension_numbers<[1], [0], [0], [1], [0, 0, 1, 1], [], []>} : vector<16x16xf32>, vector<16x32xf32>, vector<16x32xf32> -> vector<16x32xf32>
    %70 = tpu.reciprocal %67 : vector<16x1xf32> -> vector<16x1xf32>
    %71 = vector.broadcast %70 : vector<16x1xf32> to vector<16x32xf32>
    %72 = arith.mulf %69, %71 : vector<16x32xf32>
    %c0_28 = arith.constant 0 : index
    %c64 = arith.constant 64 : index
    %73 = vector.load %arg14[%c0_28, %c64] : memref<16x128xf32, #tpu.memory_space<vmem>>, vector<16x32xf32>
    tpu.vector_store %arg14[%c0_28, %c64], %72 {strides = array<i32>} : memref<16x128xf32, #tpu.memory_space<vmem>>, vector<16x32xf32>,
    %74 = vector.extract_strided_slice %16 {offsets = [0, 96], sizes = [16, 32], strides = [1, 1]} : vector<16x128xf32> to vector<16x32xf32>
    %75 = vector.extract_strided_slice %24 {offsets = [0, 96], sizes = [16, 32], strides = [1, 1]} : vector<16x128xf32> to vector<16x32xf32>
    %cst_29 = arith.constant dense<0.000000e+00> : vector<16x16xf32>
    %76 = tpu.matmul %74, %75, %cst_29 {dimension_numbers = #tpu.dot_dimension_numbers<[1], [1], [0], [0], [0, 0, 1, 0], [], []>} : vector<16x32xf32>, vector<16x32xf32>, vector<16x16xf32> -> vector<16x16xf32>
    %cst_30 = arith.constant dense<0xFF800000> : vector<16xf32>
    %77 = vector.multi_reduction <maximumf>, %76, %cst_30 [1] : vector<16x16xf32> to vector<16xf32>
    %78 = vector.shape_cast %77 : vector<16xf32> to vector<16x1xf32>
    %79 = vector.broadcast %78 : vector<16x1xf32> to vector<16x16xf32>
    %80 = arith.subf %76, %79 : vector<16x16xf32>
    %81 = math.exp %80 : vector<16x16xf32>
    %cst_31 = arith.constant dense<0.000000e+00> : vector<16xf32>
    %82 = vector.multi_reduction <add>, %81, %cst_31 [1] : vector<16x16xf32> to vector<16xf32>
    %83 = vector.shape_cast %82 : vector<16xf32> to vector<16x1xf32>
    %84 = vector.extract_strided_slice %25 {offsets = [0, 96], sizes = [16, 32], strides = [1, 1]} : vector<16x128xf32> to vector<16x32xf32>
    %cst_32 = arith.constant dense<0.000000e+00> : vector<16x32xf32>
    %85 = tpu.matmul %81, %84, %cst_32 {dimension_numbers = #tpu.dot_dimension_numbers<[1], [0], [0], [1], [0, 0, 1, 1], [], []>} : vector<16x16xf32>, vector<16x32xf32>, vector<16x32xf32> -> vector<16x32xf32>
    %86 = tpu.reciprocal %83 : vector<16x1xf32> -> vector<16x1xf32>
    %87 = vector.broadcast %86 : vector<16x1xf32> to vector<16x32xf32>
    %88 = arith.mulf %85, %87 : vector<16x32xf32>
    %c0_33 = arith.constant 0 : index
    %c96 = arith.constant 96 : index
    %89 = vector.load %arg14[%c0_33, %c96] : memref<16x128xf32, #tpu.memory_space<vmem>>, vector<16x32xf32>
    tpu.vector_store %arg14[%c0_33, %c96], %88 {strides = array<i32>} : memref<16x128xf32, #tpu.memory_space<vmem>>, vector<16x32xf32>,
    %c0_34 = arith.constant 0 : index
    %c0_35 = arith.constant 0 : index
    %90 = vector.load %arg14[%c0_34, %c0_35] : memref<16x128xf32, #tpu.memory_space<vmem>>, vector<16x128xf32>
    %c0_36 = arith.constant 0 : index
    %c0_37 = arith.constant 0 : index
    %91 = vector.load %arg9[%c0_36, %c0_37] : memref<128x8xf32, #tpu.memory_space<vmem>>, vector<128x8xf32>
    %cst_38 = arith.constant dense<0.000000e+00> : vector<16x8xf32>
    %92 = tpu.matmul %90, %91, %cst_38 {dimension_numbers = #tpu.dot_dimension_numbers<[1], [0], [0], [1], [0, 0, 1, 1], [], []>} : vector<16x128xf32>, vector<128x8xf32>, vector<16x8xf32> -> vector<16x8xf32>
    %c0_39 = arith.constant 0 : index
    %c0_40 = arith.constant 0 : index
    %93 = vector.load %arg10[%c0_39, %c0_40] : memref<1x8xf32, #tpu.memory_space<vmem>>, vector<1x8xf32>
    %94 = vector.broadcast %93 : vector<1x8xf32> to vector<16x8xf32>
    %95 = arith.addf %92, %94 : vector<16x8xf32>
    %c0_41 = arith.constant 0 : index
    %c0_42 = arith.constant 0 : index
    %96 = vector.load %arg7[%c0_41, %c0_42] : memref<8x256xf32, #tpu.memory_space<vmem>>, vector<8x256xf32>
    %cst_43 = arith.constant dense<0.000000e+00> : vector<16x256xf32>
    %97 = tpu.matmul %95, %96, %cst_43 {dimension_numbers = #tpu.dot_dimension_numbers<[1], [0], [0], [1], [0, 0, 1, 1], [], []>} : vector<16x8xf32>, vector<8x256xf32>, vector<16x256xf32> -> vector<16x256xf32>
    %98 = vector.extract_strided_slice %97 {offsets = [0, 0], sizes = [16, 128], strides = [1, 1]} : vector<16x256xf32> to vector<16x128xf32>
    %c127_i32_44 = arith.constant 127 : i32
    %99 = tpu.dynamic_rotate %98 by %c127_i32_44 dim 1 : vector<16x128xf32>, i32 -> vector<16x128xf32>
    %c1_i32_45 = arith.constant 1 : i32
    %100 = tpu.dynamic_rotate %98 by %c1_i32_45 dim 1 : vector<16x128xf32>, i32 -> vector<16x128xf32>
    %101 = arith.mulf %98, %0 : vector<16x128xf32>
    %102 = arith.mulf %99, %1 : vector<16x128xf32>
    %103 = arith.addf %101, %102 : vector<16x128xf32>
    %104 = arith.mulf %100, %2 : vector<16x128xf32>
    %105 = arith.addf %103, %104 : vector<16x128xf32>
    %cst_46 = arith.constant 0.176776692 : f32
    %106 = vector.broadcast %cst_46 : f32 to vector<16x128xf32>
    %107 = arith.mulf %105, %106 : vector<16x128xf32>
    %108 = vector.extract_strided_slice %97 {offsets = [0, 128], sizes = [16, 128], strides = [1, 1]} : vector<16x256xf32> to vector<16x128xf32>
    %c0_47 = arith.constant 0 : index
    %c0_48 = arith.constant 0 : index
    %c0_49 = arith.constant 0 : index
    %109 = vector.load %arg2[%c0_47, %c0_48, %c0_49] : memref<1x16x1xf32, #tpu.memory_space<vmem>>, vector<1x16x1xf32>
    %110 = vector.shape_cast %109 : vector<1x16x1xf32> to vector<16x1xf32>
    %c0_50 = arith.constant 0 : index
    %c0_51 = arith.constant 0 : index
    %111 = vector.load %arg8[%c0_50, %c0_51] : memref<1x128xf32, #tpu.memory_space<vmem>>, vector<1x128xf32>
    %112 = vector.broadcast %110 : vector<16x1xf32> to vector<16x128xf32>
    %113 = vector.broadcast %111 : vector<1x128xf32> to vector<16x128xf32>
    %114 = arith.mulf %112, %113 : vector<16x128xf32>
    %c127_i32_52 = arith.constant 127 : i32
    %115 = tpu.dynamic_rotate %114 by %c127_i32_52 dim 1 : vector<16x128xf32>, i32 -> vector<16x128xf32>
    %c1_i32_53 = arith.constant 1 : i32
    %116 = tpu.dynamic_rotate %114 by %c1_i32_53 dim 1 : vector<16x128xf32>, i32 -> vector<16x128xf32>
    %117 = arith.mulf %114, %0 : vector<16x128xf32>
    %118 = arith.mulf %115, %1 : vector<16x128xf32>
    %119 = arith.addf %117, %118 : vector<16x128xf32>
    %120 = arith.mulf %116, %2 : vector<16x128xf32>
    %121 = arith.addf %119, %120 : vector<16x128xf32>
    %122 = vector.extract_strided_slice %107 {offsets = [0, 0], sizes = [16, 32], strides = [1, 1]} : vector<16x128xf32> to vector<16x32xf32>
    %123 = vector.extract_strided_slice %121 {offsets = [0, 0], sizes = [16, 32], strides = [1, 1]} : vector<16x128xf32> to vector<16x32xf32>
    %cst_54 = arith.constant dense<0.000000e+00> : vector<16x16xf32>
    %124 = tpu.matmul %122, %123, %cst_54 {dimension_numbers = #tpu.dot_dimension_numbers<[1], [1], [0], [0], [0, 0, 1, 0], [], []>} : vector<16x32xf32>, vector<16x32xf32>, vector<16x16xf32> -> vector<16x16xf32>
    %cst_55 = arith.constant dense<0xFF800000> : vector<16xf32>
    %125 = vector.multi_reduction <maximumf>, %124, %cst_55 [1] : vector<16x16xf32> to vector<16xf32>
    %126 = vector.shape_cast %125 : vector<16xf32> to vector<16x1xf32>
    %127 = vector.broadcast %126 : vector<16x1xf32> to vector<16x16xf32>
    %128 = arith.subf %124, %127 : vector<16x16xf32>
    %129 = math.exp %128 : vector<16x16xf32>
    %cst_56 = arith.constant dense<0.000000e+00> : vector<16xf32>
    %130 = vector.multi_reduction <add>, %129, %cst_56 [1] : vector<16x16xf32> to vector<16xf32>
    %131 = vector.shape_cast %130 : vector<16xf32> to vector<16x1xf32>
    %132 = vector.extract_strided_slice %108 {offsets = [0, 0], sizes = [16, 32], strides = [1, 1]} : vector<16x128xf32> to vector<16x32xf32>
    %cst_57 = arith.constant dense<0.000000e+00> : vector<16x32xf32>
    %133 = tpu.matmul %129, %132, %cst_57 {dimension_numbers = #tpu.dot_dimension_numbers<[1], [0], [0], [1], [0, 0, 1, 1], [], []>} : vector<16x16xf32>, vector<16x32xf32>, vector<16x32xf32> -> vector<16x32xf32>
    %134 = tpu.reciprocal %131 : vector<16x1xf32> -> vector<16x1xf32>
    %135 = vector.broadcast %134 : vector<16x1xf32> to vector<16x32xf32>
    %136 = arith.mulf %133, %135 : vector<16x32xf32>
    %c0_58 = arith.constant 0 : index
    %c0_59 = arith.constant 0 : index
    %137 = vector.load %arg14[%c0_58, %c0_59] : memref<16x128xf32, #tpu.memory_space<vmem>>, vector<16x32xf32>
    tpu.vector_store %arg14[%c0_58, %c0_59], %136 {strides = array<i32>} : memref<16x128xf32, #tpu.memory_space<vmem>>, vector<16x32xf32>,
    %138 = vector.extract_strided_slice %107 {offsets = [0, 32], sizes = [16, 32], strides = [1, 1]} : vector<16x128xf32> to vector<16x32xf32>
    %139 = vector.extract_strided_slice %121 {offsets = [0, 32], sizes = [16, 32], strides = [1, 1]} : vector<16x128xf32> to vector<16x32xf32>
    %cst_60 = arith.constant dense<0.000000e+00> : vector<16x16xf32>
    %140 = tpu.matmul %138, %139, %cst_60 {dimension_numbers = #tpu.dot_dimension_numbers<[1], [1], [0], [0], [0, 0, 1, 0], [], []>} : vector<16x32xf32>, vector<16x32xf32>, vector<16x16xf32> -> vector<16x16xf32>
    %cst_61 = arith.constant dense<0xFF800000> : vector<16xf32>
    %141 = vector.multi_reduction <maximumf>, %140, %cst_61 [1] : vector<16x16xf32> to vector<16xf32>
    %142 = vector.shape_cast %141 : vector<16xf32> to vector<16x1xf32>
    %143 = vector.broadcast %142 : vector<16x1xf32> to vector<16x16xf32>
    %144 = arith.subf %140, %143 : vector<16x16xf32>
    %145 = math.exp %144 : vector<16x16xf32>
    %cst_62 = arith.constant dense<0.000000e+00> : vector<16xf32>
    %146 = vector.multi_reduction <add>, %145, %cst_62 [1] : vector<16x16xf32> to vector<16xf32>
    %147 = vector.shape_cast %146 : vector<16xf32> to vector<16x1xf32>
    %148 = vector.extract_strided_slice %108 {offsets = [0, 32], sizes = [16, 32], strides = [1, 1]} : vector<16x128xf32> to vector<16x32xf32>
    %cst_63 = arith.constant dense<0.000000e+00> : vector<16x32xf32>
    %149 = tpu.matmul %145, %148, %cst_63 {dimension_numbers = #tpu.dot_dimension_numbers<[1], [0], [0], [1], [0, 0, 1, 1], [], []>} : vector<16x16xf32>, vector<16x32xf32>, vector<16x32xf32> -> vector<16x32xf32>
    %150 = tpu.reciprocal %147 : vector<16x1xf32> -> vector<16x1xf32>
    %151 = vector.broadcast %150 : vector<16x1xf32> to vector<16x32xf32>
    %152 = arith.mulf %149, %151 : vector<16x32xf32>
    %c0_64 = arith.constant 0 : index
    %c32_65 = arith.constant 32 : index
    %153 = vector.load %arg14[%c0_64, %c32_65] : memref<16x128xf32, #tpu.memory_space<vmem>>, vector<16x32xf32>
    tpu.vector_store %arg14[%c0_64, %c32_65], %152 {strides = array<i32>} : memref<16x128xf32, #tpu.memory_space<vmem>>, vector<16x32xf32>,
    %154 = vector.extract_strided_slice %107 {offsets = [0, 64], sizes = [16, 32], strides = [1, 1]} : vector<16x128xf32> to vector<16x32xf32>
    %155 = vector.extract_strided_slice %121 {offsets = [0, 64], sizes = [16, 32], strides = [1, 1]} : vector<16x128xf32> to vector<16x32xf32>
    %cst_66 = arith.constant dense<0.000000e+00> : vector<16x16xf32>
    %156 = tpu.matmul %154, %155, %cst_66 {dimension_numbers = #tpu.dot_dimension_numbers<[1], [1], [0], [0], [0, 0, 1, 0], [], []>} : vector<16x32xf32>, vector<16x32xf32>, vector<16x16xf32> -> vector<16x16xf32>
    %cst_67 = arith.constant dense<0xFF800000> : vector<16xf32>
    %157 = vector.multi_reduction <maximumf>, %156, %cst_67 [1] : vector<16x16xf32> to vector<16xf32>
    %158 = vector.shape_cast %157 : vector<16xf32> to vector<16x1xf32>
    %159 = vector.broadcast %158 : vector<16x1xf32> to vector<16x16xf32>
    %160 = arith.subf %156, %159 : vector<16x16xf32>
    %161 = math.exp %160 : vector<16x16xf32>
    %cst_68 = arith.constant dense<0.000000e+00> : vector<16xf32>
    %162 = vector.multi_reduction <add>, %161, %cst_68 [1] : vector<16x16xf32> to vector<16xf32>
    %163 = vector.shape_cast %162 : vector<16xf32> to vector<16x1xf32>
    %164 = vector.extract_strided_slice %108 {offsets = [0, 64], sizes = [16, 32], strides = [1, 1]} : vector<16x128xf32> to vector<16x32xf32>
    %cst_69 = arith.constant dense<0.000000e+00> : vector<16x32xf32>
    %165 = tpu.matmul %161, %164, %cst_69 {dimension_numbers = #tpu.dot_dimension_numbers<[1], [0], [0], [1], [0, 0, 1, 1], [], []>} : vector<16x16xf32>, vector<16x32xf32>, vector<16x32xf32> -> vector<16x32xf32>
    %166 = tpu.reciprocal %163 : vector<16x1xf32> -> vector<16x1xf32>
    %167 = vector.broadcast %166 : vector<16x1xf32> to vector<16x32xf32>
    %168 = arith.mulf %165, %167 : vector<16x32xf32>
    %c0_70 = arith.constant 0 : index
    %c64_71 = arith.constant 64 : index
    %169 = vector.load %arg14[%c0_70, %c64_71] : memref<16x128xf32, #tpu.memory_space<vmem>>, vector<16x32xf32>
    tpu.vector_store %arg14[%c0_70, %c64_71], %168 {strides = array<i32>} : memref<16x128xf32, #tpu.memory_space<vmem>>, vector<16x32xf32>,
    %170 = vector.extract_strided_slice %107 {offsets = [0, 96], sizes = [16, 32], strides = [1, 1]} : vector<16x128xf32> to vector<16x32xf32>
    %171 = vector.extract_strided_slice %121 {offsets = [0, 96], sizes = [16, 32], strides = [1, 1]} : vector<16x128xf32> to vector<16x32xf32>
    %cst_72 = arith.constant dense<0.000000e+00> : vector<16x16xf32>
    %172 = tpu.matmul %170, %171, %cst_72 {dimension_numbers = #tpu.dot_dimension_numbers<[1], [1], [0], [0], [0, 0, 1, 0], [], []>} : vector<16x32xf32>, vector<16x32xf32>, vector<16x16xf32> -> vector<16x16xf32>
    %cst_73 = arith.constant dense<0xFF800000> : vector<16xf32>
    %173 = vector.multi_reduction <maximumf>, %172, %cst_73 [1] : vector<16x16xf32> to vector<16xf32>
    %174 = vector.shape_cast %173 : vector<16xf32> to vector<16x1xf32>
    %175 = vector.broadcast %174 : vector<16x1xf32> to vector<16x16xf32>
    %176 = arith.subf %172, %175 : vector<16x16xf32>
    %177 = math.exp %176 : vector<16x16xf32>
    %cst_74 = arith.constant dense<0.000000e+00> : vector<16xf32>
    %178 = vector.multi_reduction <add>, %177, %cst_74 [1] : vector<16x16xf32> to vector<16xf32>
    %179 = vector.shape_cast %178 : vector<16xf32> to vector<16x1xf32>
    %180 = vector.extract_strided_slice %108 {offsets = [0, 96], sizes = [16, 32], strides = [1, 1]} : vector<16x128xf32> to vector<16x32xf32>
    %cst_75 = arith.constant dense<0.000000e+00> : vector<16x32xf32>
    %181 = tpu.matmul %177, %180, %cst_75 {dimension_numbers = #tpu.dot_dimension_numbers<[1], [0], [0], [1], [0, 0, 1, 1], [], []>} : vector<16x16xf32>, vector<16x32xf32>, vector<16x32xf32> -> vector<16x32xf32>
    %182 = tpu.reciprocal %179 : vector<16x1xf32> -> vector<16x1xf32>
    %183 = vector.broadcast %182 : vector<16x1xf32> to vector<16x32xf32>
    %184 = arith.mulf %181, %183 : vector<16x32xf32>
    %c0_76 = arith.constant 0 : index
    %c96_77 = arith.constant 96 : index
    %185 = vector.load %arg14[%c0_76, %c96_77] : memref<16x128xf32, #tpu.memory_space<vmem>>, vector<16x32xf32>
    tpu.vector_store %arg14[%c0_76, %c96_77], %184 {strides = array<i32>} : memref<16x128xf32, #tpu.memory_space<vmem>>, vector<16x32xf32>,
    %c0_78 = arith.constant 0 : index
    %c0_79 = arith.constant 0 : index
    %186 = vector.load %arg14[%c0_78, %c0_79] : memref<16x128xf32, #tpu.memory_space<vmem>>, vector<16x128xf32>
    %c0_80 = arith.constant 0 : index
    %c0_81 = arith.constant 0 : index
    %187 = vector.load %arg11[%c0_80, %c0_81] : memref<8x128xf32, #tpu.memory_space<vmem>>, vector<8x128xf32>
    %cst_82 = arith.constant dense<0.000000e+00> : vector<8x16xf32>
    %188 = tpu.matmul %187, %186, %cst_82 {dimension_numbers = #tpu.dot_dimension_numbers<[1], [1], [0], [0], [0, 0, 1, 0], [], []>} : vector<8x128xf32>, vector<16x128xf32>, vector<8x16xf32> -> vector<8x16xf32>
    %c0_83 = arith.constant 0 : index
    %c0_84 = arith.constant 0 : index
    %189 = vector.load %arg12[%c0_83, %c0_84] : memref<8x1xf32, #tpu.memory_space<vmem>>, vector<8x1xf32>
    %190 = vector.broadcast %189 : vector<8x1xf32> to vector<8x16xf32>
    %191 = arith.addf %188, %190 : vector<8x16xf32>
    %c0_85 = arith.constant 0 : index
    %c0_86 = arith.constant 0 : index
    %c0_87 = arith.constant 0 : index
    %192 = vector.load %arg13[%c0_85, %c0_86, %c0_87] : memref<1x8x16xf32, #tpu.memory_space<vmem>>, vector<1x8x16xf32>
    %193 = vector.shape_cast %192 : vector<1x8x16xf32> to vector<8x16xf32>
    %194 = vector.shape_cast %191 : vector<8x16xf32> to vector<1x8x16xf32>
    tpu.vector_store %arg13[%c0_85, %c0_86, %c0_87], %194 {strides = array<i32>} : memref<1x8x16xf32, #tpu.memory_space<vmem>>, vector<1x8x16xf32>,
    return
  }
  func.func @transform_0(%arg0: i32) -> (i32, i32, i32) {
    %c0_i32 = arith.constant 0 : i32
    %c0_i32_0 = arith.constant 0 : i32
    %c0_i32_1 = arith.constant 0 : i32
    return %arg0, %c0_i32, %c0_i32_0 : i32, i32, i32
  }
  func.func @transform_1(%arg0: i32) -> (i32, i32, i32) {
    %c0_i32 = arith.constant 0 : i32
    %c0_i32_0 = arith.constant 0 : i32
    %c0_i32_1 = arith.constant 0 : i32
    return %arg0, %c0_i32, %c0_i32_0 : i32, i32, i32
  }
  func.func @transform_2(%arg0: i32) -> (i32, i32) {
    %c0_i32 = arith.constant 0 : i32
    %c0_i32_0 = arith.constant 0 : i32
    %c0_i32_1 = arith.constant 0 : i32
    return %c0_i32, %c0_i32_0 : i32, i32
  }
  func.func @transform_3(%arg0: i32) -> (i32, i32) {
    %c0_i32 = arith.constant 0 : i32
    %c0_i32_0 = arith.constant 0 : i32
    %c0_i32_1 = arith.constant 0 : i32
    return %c0_i32, %c0_i32_0 : i32, i32
  }
  func.func @transform_4(%arg0: i32) -> (i32, i32) {
    %c0_i32 = arith.constant 0 : i32
    %c0_i32_0 = arith.constant 0 : i32
    %c0_i32_1 = arith.constant 0 : i32
    return %c0_i32, %c0_i32_0 : i32, i32
  }
  func.func @transform_5(%arg0: i32) -> (i32, i32) {
    %c0_i32 = arith.constant 0 : i32
    %c0_i32_0 = arith.constant 0 : i32
    %c0_i32_1 = arith.constant 0 : i32
    return %c0_i32, %c0_i32_0 : i32, i32
  }
  func.func @transform_6(%arg0: i32) -> (i32, i32) {
    %c0_i32 = arith.constant 0 : i32
    %c0_i32_0 = arith.constant 0 : i32
    %c0_i32_1 = arith.constant 0 : i32
    return %c0_i32, %c0_i32_0 : i32, i32
  }
  func.func @transform_7(%arg0: i32) -> (i32, i32) {
    %c0_i32 = arith.constant 0 : i32
    %c0_i32_0 = arith.constant 0 : i32
    %c0_i32_1 = arith.constant 0 : i32
    return %c0_i32, %c0_i32_0 : i32, i32
  }
  func.func @transform_8(%arg0: i32) -> (i32, i32) {
    %c0_i32 = arith.constant 0 : i32
    %c0_i32_0 = arith.constant 0 : i32
    %c0_i32_1 = arith.constant 0 : i32
    return %c0_i32, %c0_i32_0 : i32, i32
  }
  func.func @transform_9(%arg0: i32) -> (i32, i32) {
    %c0_i32 = arith.constant 0 : i32
    %c0_i32_0 = arith.constant 0 : i32
    %c0_i32_1 = arith.constant 0 : i32
    return %c0_i32, %c0_i32_0 : i32, i32
  }
  func.func @transform_10(%arg0: i32) -> (i32, i32) {
    %c0_i32 = arith.constant 0 : i32
    %c0_i32_0 = arith.constant 0 : i32
    %c0_i32_1 = arith.constant 0 : i32
    return %c0_i32, %c0_i32_0 : i32, i32
  }
  func.func @transform_11(%arg0: i32) -> (i32, i32) {
    %c0_i32 = arith.constant 0 : i32
    %c0_i32_0 = arith.constant 0 : i32
    %c0_i32_1 = arith.constant 0 : i32
    return %c0_i32, %c0_i32_0 : i32, i32
  }
  func.func @transform_12(%arg0: i32) -> (i32, i32, i32) {
    %c0_i32 = arith.constant 0 : i32
    %c0_i32_0 = arith.constant 0 : i32
    %c0_i32_1 = arith.constant 0 : i32
    return %arg0, %c0_i32, %c0_i32_0 : i32, i32, i32
  }
}

</mosaic_0001>

<bundles_post_ra>
// kernel: tpu_custom_call.1
= control target key start
LH: loop header
LB: loop body
LE: loop exit
PB: predicated region body
PF: predicated region fallthrough
CT: control target
= control target key end

     0   :  { %s2684_s0 = inlined_call_operand.vmem [shape: f32[2,16,8], index: 0, kind: input, shape index: {}]   ;;  %s2685_s1 = inlined_call_operand.vmem [shape: f32[2,16,1], index: 1, kind: input, shape index: {}]   ;;  %s2686_s2 = inlined_call_operand.vmem [shape: f32[16,128], index: 2, kind: input, shape index: {}]   ;;  %s2687_s3 = inlined_call_operand.vmem [shape: f32[16,128], index: 3, kind: input, shape index: {}]   ;;  %s2688_s4 = inlined_call_operand.vmem [shape: f32[16,128], index: 4, kind: input, shape index: {}]   ;;  %s2689_s5 = inlined_call_operand.vmem [shape: f32[8,384], index: 5, kind: input, shape index: {}]   ;;  %s2690_s6 = inlined_call_operand.vmem [shape: f32[8,256], index: 6, kind: input, shape index: {}]   ;;  %s2691_s7 = inlined_call_operand.vmem [shape: f32[1,128], index: 7, kind: input, shape index: {}]   ;;  %s2692_s8 = inlined_call_operand.vmem [shape: f32[128,8], index: 8, kind: input, shape index: {}]   ;;  %s2693_s9 = inlined_call_operand.vmem [shape: f32[1,8], index: 9, kind: input, shape index: {}]   ;;  %s2694_s10 = inlined_call_operand.vmem [shape: f32[8,128], index: 10, kind: input, shape index: {}]   ;;  %s2695_s11 = inlined_call_operand.vmem [shape: f32[8,1], index: 11, kind: input, shape index: {}]   ;;  %s2696_s12 = inlined_call_operand.hbm [shape: f32[2,8,16], index: 12, kind: output, shape index: {}]  }
   0x1   :  { %2708 = sst [smem:[#allocation6_spill]] %s2684_s0 }
   0x2   :  { %2709 = sst [smem:[#allocation7_spill]] %s2685_s1 }
   0x3   :  { %2710 = sst [smem:[#allocation8_spill]] %s2686_s2 }
   0x4   :  { %17 = vsyncpa [#allocation4], 0 }
   0x5   :  { %19 = vsyncpa [#allocation4 + $0x1], 0  ;;  %s2209_s21 = smov 0   ;;  %s2211_s22 = smov 0  }
   0x6   :  { %s2213_s23 = smov 0   ;;  %s2215_s24 = smov 0  }
   0x7 LB: > { %s2230_s25 = sadd.s32 4294967295, %s2136_s24   ;;  %s1858_s26 = sadd.s32 4294967294, %s2136_s24   ;;  %s2136_s24 = sphi %s2215_s24, %s2729_s24   ;;  %s2132_s23 = sphi %s2213_s23, %s2728_s23   ;;  %s2128_s22 = sphi %s2211_s22, %s2727_s22   ;;  %s2124_s21 = sphi %s2209_s21, %s2726_s21  }
   0x8   : > { %s2234_s27 = sadd.s32 1, %s2136_s24   ;;  %s294_s28 = sadd.s32 1, %s2132_s23 }
   0x9   : > { %s291_s29 = ssub.s32 %s2136_s24, %s2234_s27  ;;  %p304_p0 = scmp.ne.s32.totalorder %s2132_s23, %s2128_s22 }
   0xa   : > { %p292_p1 = scmp.eq.s32.totalorder %s291_s29, 0  ;;  %p305_p2 = scmp.eq.s32.totalorder %s2230_s25, 1 }
   0xb   : > { %p310_p3 = scmp.ne.s32.totalorder %s2128_s22, %s2124_s21  ;;  %p311_p4 = scmp.eq.s32.totalorder %s1858_s26, 1 }
   0xc   : > { %s2245_s30 = scalar_select %p292_p1, %s2132_s23, %s294_s28  }
   0xd   : > { %p2247_p5 = por %p305_p2, %p304_p0  ;;  %p2251_p6 = por %p311_p4, %p310_p3 }
   0xe   : > { %p1861_p7 = scmp.ge.s32.totalorder %s2136_s24, 1  ;;  %p375_p8 = scmp.lt.s32.totalorder %s2136_s24, 3 }
  0x10   : > { %p376_p9 = pnand %p1861_p7, %p375_p8 }
  0x11   : > { %p422_p10 = scmp.lt.s32.totalorder (!%p376_p9), %s2230_s25, 1  ;;  %s2713_s0 = sld [smem:[#allocation6_spill]] (!%p376_p9) }
  0x12   : > { %379 = sbr.rel (%p376_p9) target bundleno = 2148 (0x864), region = 68  ;;  %s2698_s15 = smov (!%p376_p9), 1  }
  0x13   : > { %s2706_s16 = smov (!%p376_p9), 127   ;;  %s2714_s2 = sld [smem:[#allocation8_spill]] (!%p376_p9) }
  0x14   : > { %s2704_s17 = smov (!%p376_p9), 96   ;;  %s2700_s26 = smov (!%p376_p9), 32  }
  0x15   : > { %s2718_s1 = sld [smem:[#allocation7_spill]] (!%p376_p9)  ;;  %s1926_s18 = sshll.u32 (!%p376_p9), %s2230_s25, 3 }
  0x17   : > { %v441_v0 = vld [vmem:[%s2689_s5 + $0x8] sm:$0xff]  ;;  %v440_v1 = vld [vmem:[%s2689_s5] sm:$0xff]  ;;  %s2265_s19 = scalar_select %p422_p10, %s2230_s25, 1  ;;  %vm443_vm0 = vcmask 64512   ;;  %v442_v28 = vld [vmem:[%s2689_s5 + $0x10] sm:$0xff]  ;;  %vm557_vm1 = vcmask 261120  }
  0x18   : > { %488 = vmatpush.msra.mxu1 %v441_v0  ;;  %465 = vmatpush.msra.mxu0 %v440_v1  ;;  %v2293_v9 = vld [vmem:[%s2687_s3] sm:$0xff]  ;;  %v2308_v22 = vld [vmem:[%s2687_s3 + $0x8] sm:$0xff]  ;;  %vm593_vm2 = vcmask 130048  }
  0x19   : > { %s2697_s20 = sshll.u32 %s2265_s19, 4  ;;  %v2288_v8 = vld [vmem:[%s2714_s2] sm:$0xff]  ;;  %v2314_v24 = vld [vmem:[%s2714_s2 + $0x8] sm:$0xff]  ;;  %511 = vmatpush.msra.mxu2 %v442_v28  ;;  %s2717_s2 = sshll.u32 %s2265_s19, 4 }
  0x1a   : > { %s426_s29 = scalar_lea.vmem %s2713_s0, %s2697_s20  ;;  %v2298_v11 = vld [vmem:[%s2688_s4] sm:$0xff]  ;;  %v2324_v30 = vld [vmem:[%s2688_s4 + $0x8] sm:$0xff]  ;;  %s2720_s0 = smov 1  }
  0x1b   : > { %v438_v2 = vld [vmem:[%s426_s29] sm:$0xff]  ;;  %v439_v3 = vld [vmem:[%s426_s29 + $0x8] sm:$0xff]  ;;  %s2719_s29 = smov 127   ;;  %s2722_s19 = smov 64  }
  0x1c   : > { %1869 = vmatmul.msk.f32.vlgmr.msra.gmra.mxu1 %vm443_vm0, %v438_v2  ;;  %1867 = vmatmul.msk.f32.vlgmr.msra.gmra.mxu0 %vm443_vm0, %v438_v2  ;;  %s419_s20 = sand.u32 1, %s2128_s22  }
  0x1d   : > { %1871 = vmatmul.msk.f32.vlgmr.msra.gmra.mxu2 %vm443_vm0, %v438_v2 }
  0x24   : > { %1870 = vmatmul.msk.f32.gmra.mxu1 %vm443_vm0, %v439_v3  ;;  %1868 = vmatmul.msk.f32.gmra.mxu0 %vm443_vm0, %v439_v3 }
  0x25   : > { %1872 = vmatmul.msk.f32.gmra.mxu2 %vm443_vm0, %v439_v3 }
  0x99   : > { %v490_v4 = vpop.f32.mrf.mxu1  ;;  %v467_v5 = vpop.f32.mrf.mxu0 }
  0x9a   : > { %543 = vrot.lane.b32.xlu2 %v490_v4, %s2698_s15  ;;  %539 = vrot.lane.b32.xlu1 %v490_v4, %s2706_s16  ;;  %v547_v13 = vmul.f32 %v490_v4, %v2288_v8  ;;  %v527_v21 = vmul.f32 %v467_v5, %v2288_v8 }
  0xa0   : > { %v513_v53 = vpop.f32.mrf.mxu2 }
  0xa1   : > { %v493_v6 = vpop.f32.mrf.mxu1  ;;  %v470_v7 = vpop.f32.mrf.mxu0 }
  0xa2   : > { %541 = vrot.lane.b32.xlu0 %v493_v6, %s2706_s16  ;;  %523 = vrot.lane.b32.xlu2 %v467_v5, %s2698_s15  ;;  %v548_v31 = vmul.f32 %v493_v6, %v2314_v24  ;;  %v528_v39 = vmul.f32 %v470_v7, %v2314_v24 }
  0xa3   : > { %519 = vrot.lane.b32.xlu1 %v467_v5, %s2706_s16 }
  0xa8   : > { %v516_v56 = vpop.f32.mrf.mxu2 }
  0xa9   : > { %v1976_v57 = vpack.i.bf16 %v513_v53, %v516_v56  ;;  %632 = vmatpush.msrb.mxu0 %v516_v56 }
  0xaa   : > { %545 = vrot.lane.b32.xlu0 %v493_v6, %s2698_s15 }
  0xab   : > { %525 = vrot.lane.b32.xlu1 %v470_v7, %s2698_s15  ;;  %s2702_s15 = smov 64   ;;  %633 = vmatpush.msrb.mxu0 %v513_v53 }
  0xb2   : > { %521 = vrot.lane.b32.xlu0 %v470_v7, %s2706_s16  ;;  %s2723_s16 = smov 32  }
  0xf4   : > { %v544_v10 = vpop.permute.xlu2 %543 }
  0xf5   : > { %v553_v15 = vmul.f32 %v544_v10, %v2298_v11 }
  0xfc   : > { %v524_v19 = vpop.permute.xlu2 %523 }
  0xfd   : > { %v533_v25 = vmul.f32 %v524_v19, %v2298_v11 }
 0x10c   : > { %v540_v12 = vpop.permute.xlu1 %539 }
 0x10d   : > { %v549_v14 = vmul.f32 %v540_v12, %v2293_v9 }
 0x10f   : > { %v551_v16 = vadd.f32 %v549_v14, %v547_v13 }
 0x111   : > { %v555_v17 = vadd.f32 %v553_v15, %v551_v16 }
 0x113   : > { %677 = vrot.lane.b32.xlu0 %v555_v17, %s2704_s17 }
 0x114   : > { %v542_v18 = vpop.permute.xlu0 %541 }
 0x115   : > { %v520_v20 = vpop.permute.xlu1 %519  ;;  %v550_v27 = vmul.f32 %v542_v18, %v2308_v22 }
 0x116   : > { %v529_v23 = vmul.f32 %v520_v20, %v2293_v9 }
 0x117   : > { %v552_v34 = vadd.f32 %v550_v27, %v548_v31 }
 0x118   : > { %v531_v26 = vadd.f32 %v529_v23, %v527_v21 }
 0x11a   : > { %v535_v29 = vadd.f32 %v533_v25, %v531_v26 }
 0x11c   : > { %v537_v32 = vmul.f32 0.17677669, %v535_v29  ;;  %v546_v33 = vpop.permute.xlu0 %545 }
 0x11d   : > { %v554_v35 = vmul.f32 %v546_v33, %v2324_v30  ;;  %v526_v37 = vpop.permute.xlu1 %525 }
 0x11e   : > { %673 = vrot.lane.b32.xlu1 %v537_v32, %s2704_s17  ;;  %v534_v41 = vmul.f32 %v526_v37, %v2324_v30 }
 0x11f   : > { %v556_v36 = vadd.f32 %v554_v35, %v552_v34 }
 0x121   : > { %1873 = vmatpush.xpose.msk.msra.mxu3 %vm557_vm1, %v556_v36  ;;  %679 = vrot.lane.b32.xlu2 %v556_v36, %s2704_s17 }
 0x122   : > { %814 = vrot.lane.b32.xlu0 %v556_v36, %s2702_s15 }
 0x124   : > { %v522_v38 = vpop.permute.xlu0 %521 }
 0x125   : > { %v530_v40 = vmul.f32 %v522_v38, %v2308_v22  ;;  %1874 = vmatpush.xpose.msk.msra.mxu3 %vm557_vm1, %v555_v17 }
 0x126   : > { %947 = vrot.lane.b32.xlu1 %v556_v36, %s2700_s26 }
 0x127   : > { %v532_v42 = vadd.f32 %v530_v40, %v528_v39 }
 0x128   : > { %1875 = vmatmul.msk.f32.vlgmr.msra.gmra.mxu3 %vm557_vm1, %v537_v32 }
 0x129   : > { %812 = vrot.lane.b32.xlu2 %v555_v17, %s2702_s15  ;;  %v536_v43 = vadd.f32 %v534_v41, %v532_v42 }
 0x12a   : > { %945 = vrot.lane.b32.xlu0 %v555_v17, %s2700_s26 }
 0x12b   : > { %v538_v44 = vmul.f32 0.17677669, %v536_v43 }
 0x12e   : > { %808 = vrot.lane.b32.xlu1 %v537_v32, %s2702_s15 }
 0x130   : > { %1876 = vmatmul.msk.f32.gmra.mxu3 %vm557_vm1, %v538_v44 }
 0x131   : > { %675 = vrot.lane.b32.xlu2 %v538_v44, %s2704_s17 }
 0x132   : > { %810 = vrot.lane.b32.xlu0 %v538_v44, %s2702_s15 }
 0x136   : > { %943 = vrot.lane.b32.xlu1 %v538_v44, %s2700_s26 }
 0x139   : > { %941 = vrot.lane.b32.xlu2 %v537_v32, %s2700_s26 }
 0x141   : > { %1977 = vrot.lane.b32.xlu2 %v1976_v57, %s2704_s17 }
 0x17b   : > { %v680_v45 = vpop.permute.xlu2 %679 }
 0x17c   : > { %1879 = vmatpush.xpose.msk.msrb.mxu1 %vm557_vm1, %v680_v45 }
 0x183   : > { %v813_v47 = vpop.permute.xlu2 %812 }
 0x185   : > { %v678_v46 = vpop.permute.xlu0 %677 }
 0x186   : > { %1880 = vmatpush.xpose.msk.msrb.mxu1 %vm557_vm1, %v678_v46 }
 0x18b   : > { %v676_v50 = vpop.permute.xlu2 %675 }
 0x190   : > { %v674_v48 = vpop.permute.xlu1 %673 }
 0x191   : > { %1881 = vmatmul.msk.f32.vlgmr.msrb.gmra.mxu1 %vm557_vm1, %v674_v48 }
 0x193   : > { %v942_v54 = vpop.permute.xlu2 %941 }
 0x194   : > { %v815_v49 = vpop.permute.xlu0 %814 }
 0x195   : > { %1885 = vmatpush.xpose.msk.msrb.mxu3 %vm557_vm1, %v815_v49 }
 0x198   : > { %v948_v51 = vpop.permute.xlu1 %947 }
 0x199   : > { %1882 = vmatmul.msk.f32.gmra.mxu1 %vm557_vm1, %v676_v50  ;;  %1886 = vmatpush.xpose.msk.msrb.mxu3 %vm557_vm1, %v813_v47 }
 0x19a   : > { %1891 = vmatpush.xpose.msk.msra.mxu1 %vm557_vm1, %v948_v51 }
 0x19b   : > { %v1978_v10 = vpop.permute.xlu2 %1977 }
 0x19c   : > { %v946_v52 = vpop.permute.xlu0 %945  ;;  %v1979_v12 = vunpack.i.l.bf16 %v1978_v10  ;;  %v1980_v13 = vunpack.i.h.bf16 %v1978_v10 }
 0x19e   : > { %1892 = vmatpush.xpose.msk.msra.mxu1 %vm557_vm1, %v946_v52  ;;  %758 = vmatpush.msrb.mxu2 %v1979_v12 }
 0x1a0   : > { %v809_v55 = vpop.permute.xlu1 %808  ;;  %759 = vmatpush.msrb.mxu2 %v1980_v13 }
 0x1a1   : > { %1887 = vmatmul.msk.f32.vlgmr.msrb.gmra.mxu3 %vm557_vm1, %v809_v55  ;;  %1893 = vmatmul.msk.f32.vlgmr.msra.gmra.mxu1 %vm557_vm1, %v942_v54 }
 0x1a4   : > { %v811_v58 = vpop.permute.xlu0 %810 }
 0x1a8   : > { %v944_v59 = vpop.permute.xlu1 %943 }
 0x1a9   : > { %1888 = vmatmul.msk.f32.gmra.mxu3 %vm557_vm1, %v811_v58  ;;  %1894 = vmatmul.msk.f32.gmra.mxu1 %vm557_vm1, %v944_v59 }
 0x1ab   : > { %v587_v60 = vpop.f32.mrf.mxu3 }
 0x1ac   : > { %v594_v61 = vsel %vm593_vm2, %v587_v60, -inf }
 0x1ad   : > { %595 = vmax.xlane.f32.xlu0 %v594_v61 }
 0x1b3   : > { %v590_v62 = vpop.f32.mrf.mxu3 }
 0x1b4   : > { %v597_v63 = vsel %vm593_vm2, %v590_v62, -inf }
 0x1b5   : > { %598 = vmax.xlane.f32.xlu0 %v597_v63 }
 0x20e   : > { %v706_v0 = vpop.f32.mrf.mxu1 }
 0x20f   : > { %v712_v1 = vsel %vm593_vm2, %v706_v0, -inf }
 0x210   : > { %713 = vmax.xlane.f32.xlu2 %v712_v1 }
 0x216   : > { %v709_v2 = vpop.f32.mrf.mxu1 }
 0x217   : > { %v715_v3 = vsel %vm593_vm2, %v709_v2, -inf }
 0x218   : > { %716 = vmax.xlane.f32.xlu1 %v715_v3 }
 0x21e   : > { %v974_v4 = vpop.f32.mrf.mxu1 }
 0x21f   : > { %v980_v5 = vsel %vm593_vm2, %v974_v4, -inf }
 0x220   : > { %981 = vmax.xlane.f32.xlu1 %v980_v5  ;;  %v596_v6 = vpop.xlane.xlu0 %595 }
 0x221   : > { %v600_v7 = vsub.f32 %v587_v60, %v596_v6 }
 0x223   : > { %v602_v14 = vmul.f32 1.442695, %v600_v7 }
 0x224   : > { %v841_v15 = vpop.f32.mrf.mxu3 }
 0x225   : > { %2010 = vpow2.f32 %v602_v14  ;;  %v847_v16 = vsel %vm593_vm2, %v841_v15, -inf }
 0x226   : > { %v977_v17 = vpop.f32.mrf.mxu1  ;;  %848 = vmax.xlane.f32.xlu0 %v847_v16 }
 0x227   : > { %v983_v18 = vsel %vm593_vm2, %v977_v17, -inf }
 0x228   : > { %1982 = vrot.lane.b32.xlu2 %v1976_v57, %s2700_s26  ;;  %984 = vmax.xlane.f32.xlu1 %v983_v18  ;;  %v599_v19 = vpop.xlane.xlu0 %598 }
 0x229   : > { %v601_v20 = vsub.f32 %v590_v62, %v599_v19 }
 0x22b   : > { %v2011_v21 = vpop.eup %2010  ;;  %v604_v23 = vmul.f32 1.442695, %v601_v20 }
 0x22c   : > { %v844_v25 = vpop.f32.mrf.mxu3  ;;  %1877 = vmatmul.msk.f32.vlgmr.msrb.gmra.mxu0 %vm593_vm2, %v2011_v21  ;;  %v606_v62 = vsel %vm593_vm2, %v2011_v21, 0.0 }
 0x22d   : > { %2012 = vpow2.f32 %v604_v23  ;;  %v850_v26 = vsel %vm593_vm2, %v844_v25, -inf }
 0x22e   : > { %851 = vmax.xlane.f32.xlu0 %v850_v26 }
 0x233   : > { %v2371_v27 = vpop.eup %2012 }
 0x234   : > { %1878 = vmatmul.msk.f32.gmra.mxu0 %vm593_vm2, %v2371_v27 }
 0x241   : > { %1987 = vrot.lane.b32.xlu1 %v1976_v57, %s2702_s15 }
 0x283   : > { %v714_v28 = vpop.xlane.xlu2 %713 }
 0x284   : > { %v718_v29 = vsub.f32 %v706_v0, %v714_v28 }
 0x286   : > { %v720_v31 = vmul.f32 1.442695, %v718_v29 }
 0x288   : > { %2014 = vpow2.f32 %v720_v31 }
 0x28b   : > { %v717_v32 = vpop.xlane.xlu1 %716  ;;  %v1983_v33 = vpop.permute.xlu2 %1982 }
 0x28c   : > { %v719_v34 = vsub.f32 %v709_v2, %v717_v32  ;;  %v1984_v35 = vunpack.i.l.bf16 %v1983_v33  ;;  %v1985_v38 = vunpack.i.h.bf16 %v1983_v33  ;;  %v609_v2 = vsel %vm593_vm2, %v2371_v27, 0.0 }
 0x28e   : > { %v2015_v36 = vpop.eup %2014  ;;  %v722_v37 = vmul.f32 1.442695, %v719_v34  ;;  %1024 = vmatpush.msra.mxu2 %v1984_v35 }
 0x28f   : > { %1883 = vmatmul.msk.f32.vlgmr.msrb.gmra.mxu2 %vm593_vm2, %v2015_v36  ;;  %v724_v39 = vsel %vm593_vm2, %v2015_v36, 0.0 }
 0x290   : > { %2016 = vpow2.f32 %v722_v37  ;;  %725 = vadd.xlane.f32.xlu2 %v724_v39  ;;  %1025 = vmatpush.msra.mxu2 %v1985_v38 }
 0x293   : > { %v982_v40 = vpop.xlane.xlu1 %981 }
 0x294   : > { %v986_v41 = vsub.f32 %v974_v4, %v982_v40 }
 0x296   : > { %v2017_v42 = vpop.eup %2016  ;;  %v988_v43 = vmul.f32 1.442695, %v986_v41 }
 0x297   : > { %1884 = vmatmul.msk.f32.gmra.mxu2 %vm593_vm2, %v2017_v42  ;;  %v727_v58 = vsel %vm593_vm2, %v2017_v42, 0.0 }
 0x298   : > { %2018 = vpow2.f32 %v988_v43 }
 0x299   : > { %v849_v44 = vpop.xlane.xlu0 %848 }
 0x29a   : > { %v853_v45 = vsub.f32 %v841_v15, %v849_v44 }
 0x29b   : > { %v985_v46 = vpop.xlane.xlu1 %984 }
 0x29c   : > { %v855_v47 = vmul.f32 1.442695, %v853_v45  ;;  %v987_v48 = vsub.f32 %v977_v17, %v985_v46 }
 0x29e   : > { %v2019_v49 = vpop.eup %2018  ;;  %2020 = vpow2.f32 %v855_v47  ;;  %v990_v50 = vmul.f32 1.442695, %v987_v48 }
 0x29f   : > { %1895 = vmatmul.msk.f32.vlgmr.msra.gmra.mxu2 %vm593_vm2, %v2019_v49  ;;  %v992_v0 = vsel %vm593_vm2, %v2019_v49, 0.0 }
 0x2a0   : > { %2022 = vpow2.f32 %v990_v50 }
 0x2a1   : > { %v852_v51 = vpop.xlane.xlu0 %851 }
 0x2a2   : > { %v854_v52 = vsub.f32 %v844_v25, %v852_v51 }
 0x2a4   : > { %v2021_v53 = vpop.eup %2020  ;;  %v857_v54 = vmul.f32 1.442695, %v854_v52 }
 0x2a5   : > { %v859_v55 = vsel %vm593_vm2, %v2021_v53, 0.0 }
 0x2a6   : > { %v2023_v56 = vpop.eup %2022  ;;  %2024 = vpow2.f32 %v857_v54  ;;  %860 = vadd.xlane.f32.xlu0 %v859_v55 }
 0x2a7   : > { %1896 = vmatmul.msk.f32.gmra.mxu2 %vm593_vm2, %v2023_v56  ;;  %v995_v1 = vsel %vm593_vm2, %v2023_v56, 0.0 }
 0x2a9   : > { %v2395_v26 = vpop.f32.mrf.mxu0 }
 0x2ac   : > { %v2025_v57 = vpop.eup %2024 }
 0x2ad   : > { %v862_v59 = vsel %vm593_vm2, %v2025_v57, 0.0 }
 0x2ae   : > { %728 = vadd.xlane.f32.xlu0 %v727_v58  ;;  %863 = vadd.xlane.f32.xlu1 %v862_v59 }
 0x2b1   : > { %v2401_v37 = vpop.f32.mrf.mxu0 }
 0x2b3   : > { %v1988_v60 = vpop.permute.xlu1 %1987 }
 0x2b4   : > { %v1989_v61 = vunpack.i.l.bf16 %v1988_v60  ;;  %v1990_v63 = vunpack.i.h.bf16 %v1988_v60 }
 0x2b6   : > { %891 = vmatpush.msra.mxu0 %v1989_v61  ;;  %607 = vadd.xlane.f32.xlu0 %v606_v62 }
 0x2b8   : > { %892 = vmatpush.msra.mxu0 %v1990_v63 }
 0x2b9   : > { %1889 = vmatmul.msk.f32.vlgmr.msra.gmra.mxu0 %vm593_vm2, %v2021_v53 }
 0x2be   : > { %993 = vadd.xlane.f32.xlu0 %v992_v0 }
 0x2c1   : > { %1890 = vmatmul.msk.f32.gmra.mxu0 %vm593_vm2, %v2025_v57 }
 0x2c6   : > { %996 = vadd.xlane.f32.xlu0 %v995_v1 }
 0x2ce   : > { %610 = vadd.xlane.f32.xlu0 %v609_v2 }
 0x303   : > { %v726_v3 = vpop.xlane.xlu2 %725 }
 0x304   : > { %2026 = vrcp.f32 %v726_v3  ;;  %v778_v7 = vand.u32 2147483648, %v726_v3  ;;  %v776_v12 = vand.u32 2147483647, %v726_v3  ;;  %vm772_vm4 = vweird.f32 %v726_v3 }
 0x306   : > { %v779_v14 = vor.u32 1.1754944e-38, %v778_v7  ;;  %vm777_vm6 = vcmp.eq.f32.partialorder %v776_v12, 8.507059e+37 }
 0x30a   : > { %v2027_v4 = vpop.eup %2026 }
 0x30b   : > { %v768_v5 = vmul.f32 %v2027_v4, %v726_v3  ;;  %vm773_vm3 = vweird.f32 %v2027_v4 }
 0x30c   : > { %vm774_vm5 = vmor %vm772_vm4, %vm773_vm3 }
 0x30d   : > { %v769_v6 = vsub.f32 1.0, %v768_v5 }
 0x30f   : > { %v770_v10 = vmul.f32 %v2027_v4, %v769_v6 }
 0x311   : > { %v771_v13 = vadd.f32 %v2027_v4, %v770_v10 }
 0x312   : > { %v761_v16 = vpop.f32.mrf.mxu2 }
 0x313   : > { %v775_v15 = vsel %vm774_vm5, %v2027_v4, %v771_v13 }
 0x314   : > { %v780_v17 = vsel %vm777_vm6, %v779_v14, %v775_v15 }
 0x315   : > { %v795_v18 = vmul.f32 %v780_v17, %v761_v16 }
 0x317   : > { %799 = vrot.lane.b32.xlu2 %v795_v18, %s2700_s26 }
 0x319   : > { %v861_v19 = vpop.xlane.xlu0 %860 }
 0x31a   : > { %2028 = vrcp.f32 %v861_v19  ;;  %v911_v44 = vand.u32 2147483648, %v861_v19  ;;  %vm905_vm11 = vweird.f32 %v861_v19  ;;  %v909_v48 = vand.u32 2147483647, %v861_v19  ;;  %v764_v51 = vpop.f32.mrf.mxu2 }
 0x31c   : > { %v912_v57 = vor.u32 1.1754944e-38, %v911_v44  ;;  %vm910_vm15 = vcmp.eq.f32.partialorder %v909_v48, 8.507059e+37 }
 0x320   : > { %v2029_v20 = vpop.eup %2028 }
 0x321   : > { %v2392_v21 = vpop.xlane.xlu1 %863  ;;  %v729_v23 = vpop.xlane.xlu0 %728  ;;  %v901_v25 = vmul.f32 %v2029_v20, %v861_v19  ;;  %vm906_vm8 = vweird.f32 %v2029_v20 }
 0x322   : > { %2030 = vrcp.f32 %v2392_v21  ;;  %v792_v36 = vand.u32 2147483648, %v729_v23  ;;  %v790_v39 = vand.u32 2147483647, %v729_v23  ;;  %vm786_vm9 = vweird.f32 %v729_v23  ;;  %vm2406_vm13 = vmor %vm905_vm11, %vm906_vm8 }
 0x323   : > { %2032 = vrcp.f32 %v729_v23  ;;  %v902_v27 = vsub.f32 1.0, %v901_v25  ;;  %vm919_vm6 = vweird.f32 %v2392_v21  ;;  %v925_v3 = vand.u32 2147483648, %v2392_v21 }
 0x324   : > { %v793_v45 = vor.u32 1.1754944e-38, %v792_v36  ;;  %vm791_vm12 = vcmp.eq.f32.partialorder %v790_v39, 8.507059e+37  ;;  %v923_v7 = vand.u32 2147483647, %v2392_v21 }
 0x325   : > { %v903_v34 = vmul.f32 %v2029_v20, %v902_v27  ;;  %v926_v15 = vor.u32 1.1754944e-38, %v925_v3  ;;  %v1082_v3 = vld [vmem:[%s2692_s8 + $0x30] sm:$0xff] }
 0x327   : > { %v904_v41 = vadd.f32 %v2029_v20, %v903_v34 }
 0x328   : > { %v2397_v28 = vpop.eup %2030 }
 0x329   : > { %v2033_v29 = vpop.eup %2032  ;;  %v608_v31 = vpop.xlane.xlu0 %607  ;;  %v915_v33 = vmul.f32 %v2397_v28, %v2392_v21  ;;  %v908_v54 = vsel %vm2406_vm13, %v2029_v20, %v904_v41  ;;  %vm920_vm3 = vweird.f32 %v2397_v28 }
 0x32a   : > { %v782_v32 = vmul.f32 %v2033_v29, %v729_v23  ;;  %2034 = vrcp.f32 %v608_v31  ;;  %vm787_vm7 = vweird.f32 %v2033_v29  ;;  %v652_v59 = vand.u32 2147483648, %v608_v31  ;;  %vm921_vm8 = vmor %vm919_vm6, %vm920_vm3 }
 0x32b   : > { %v916_v40 = vsub.f32 1.0, %v915_v33  ;;  %vm788_vm10 = vmor %vm786_vm9, %vm787_vm7  ;;  %v650_v60 = vand.u32 2147483647, %v608_v31  ;;  %v913_v62 = vsel %vm910_vm15, %v912_v57, %v908_v54  ;;  %vm646_vm4 = vweird.f32 %v608_v31 }
 0x32c   : > { %v783_v35 = vsub.f32 1.0, %v782_v32  ;;  %v653_v4 = vor.u32 1.1754944e-38, %v652_v59  ;;  %vm924_vm9 = vcmp.eq.f32.partialorder %v923_v7, 8.507059e+37  ;;  %v1090_v59 = vld [vmem:[%s2692_s8 + $0x70] sm:$0xff] }
 0x32d   : > { %v917_v55 = vmul.f32 %v2397_v28, %v916_v40  ;;  %vm651_vm7 = vcmp.eq.f32.partialorder %v650_v60, 8.507059e+37  ;;  %v1089_v60 = vld [vmem:[%s2692_s8 + $0x68] sm:$0xff]  ;;  %v1078_v7 = vld [vmem:[%s2692_s8 + $0x10] sm:$0xff] }
 0x32e   : > { %v784_v38 = vmul.f32 %v2033_v29, %v783_v35 }
 0x32f   : > { %v918_v1 = vadd.f32 %v2397_v28, %v917_v55 }
 0x330   : > { %v2035_v42 = vpop.eup %2034  ;;  %v785_v43 = vadd.f32 %v2033_v29, %v784_v38 }
 0x331   : > { %v642_v46 = vmul.f32 %v2035_v42, %v608_v31  ;;  %v2403_v47 = vpop.xlane.xlu0 %993  ;;  %vm647_vm14 = vweird.f32 %v2035_v42  ;;  %v922_v13 = vsel %vm921_vm8, %v2397_v28, %v918_v1  ;;  %v1027_v28 = vpop.f32.mrf.mxu2  ;;  %v1083_v1 = vld [vmem:[%s2692_s8 + $0x38] sm:$0xff] }
 0x332   : > { %2036 = vrcp.f32 %v2403_v47  ;;  %v789_v49 = vsel %vm788_vm10, %v2033_v29, %v785_v43  ;;  %vm648_vm5 = vmor %vm646_vm4, %vm647_vm14  ;;  %v1044_v18 = vand.u32 2147483648, %v2403_v47  ;;  %v927_v20 = vsel %vm924_vm9, %v926_v15, %v922_v13 }
 0x333   : > { %v643_v52 = vsub.f32 1.0, %v642_v46  ;;  %v794_v53 = vsel %vm791_vm12, %v793_v45, %v789_v49  ;;  %v1042_v21 = vand.u32 2147483647, %v2403_v47  ;;  %vm1038_vm11 = vweird.f32 %v2403_v47 }
 0x334   : > { %v796_v56 = vmul.f32 %v794_v53, %v764_v51  ;;  %v1045_v29 = vor.u32 1.1754944e-38, %v1044_v18  ;;  %vm805_vm9 = vcmask 523520   ;;  %v2143_v13 = vmov 0  }
 0x335   : > { %v644_v58 = vmul.f32 %v2035_v42, %v643_v52  ;;  %vm1043_vm13 = vcmp.eq.f32.partialorder %v1042_v21, 8.507059e+37  ;;  %1991 = vset.pattern.permute.xlu0 %v2143_v13  ;;  %1992 = vset.pattern.permute.xlu2 %v2143_v13 }
 0x336   : > { %801 = vrot.lane.b32.xlu2 %v796_v56, %s2700_s26  ;;  %v894_v61 = vpop.f32.mrf.mxu0  ;;  %s431_s26 = scalar_lea.vmem %s2718_s1, %s2717_s2  ;;  %s1862_s2 = sshll.u32 %s419_s20, 3 }
 0x337   : > { %v645_v63 = vadd.f32 %v2035_v42, %v644_v58  ;;  %v928_v0 = vmul.f32 %v913_v62, %v894_v61  ;;  %v1091_v58 = vld [vmem:[%s2692_s8 + $0x78] sm:$0xff]  ;;  %v1086_v62 = vld [vmem:[%s2692_s8 + $0x50] sm:$0xff]  ;;  %v1193_v15 = vld [vmem:[%s431_s26] sm:$0xff] }
 0x338   : > { %v2037_v2 = vpop.eup %2036  ;;  %1096 = vmatpush.msra.mxu3 %v1091_v58  ;;  %v1087_v61 = vld [vmem:[%s2692_s8 + $0x58] sm:$0xff] }
 0x339   : > { %v1034_v5 = vmul.f32 %v2037_v2, %v2403_v47  ;;  %932 = vrot.lane.b32.xlu0 %v928_v0, %s2702_s15  ;;  %v997_v6 = vpop.xlane.xlu0 %996  ;;  %v649_v10 = vsel %vm648_vm5, %v2035_v42, %v645_v63  ;;  %vm1039_vm10 = vweird.f32 %v2037_v2  ;;  %v1030_v45 = vpop.f32.mrf.mxu2  ;;  %v1085_v63 = vld [vmem:[%s2692_s8 + $0x48] sm:$0xff]  ;;  %v1084_v0 = vld [vmem:[%s2692_s8 + $0x40] sm:$0xff] }
 0x33a   : > { %2038 = vrcp.f32 %v997_v6  ;;  %v654_v14 = vsel %vm651_vm7, %v653_v4, %v649_v10  ;;  %vm1040_vm12 = vmor %vm1038_vm11, %vm1039_vm10  ;;  %v1058_v35 = vand.u32 2147483648, %v997_v6  ;;  %v1056_v39 = vand.u32 2147483647, %v997_v6  ;;  %1097 = vmatpush.msra.mxu3 %v1090_v59  ;;  %v1081_v4 = vld [vmem:[%s2692_s8 + $0x28] sm:$0xff] }
 0x33b   : > { %v1035_v12 = vsub.f32 1.0, %v1034_v5  ;;  %v669_v16 = vmul.f32 %v654_v14, %v2395_v26  ;;  %vm1052_vm15 = vweird.f32 %v997_v6  ;;  %v1080_v5 = vld [vmem:[%s2692_s8 + $0x20] sm:$0xff]  ;;  %v1077_v10 = vld [vmem:[%s2692_s8 + $0x8] sm:$0xff]  ;;  %vm938_vm10 = vcmask 785920  }
 0x33c   : > { %v1059_v42 = vor.u32 1.1754944e-38, %v1058_v35  ;;  %vm1057_vm4 = vcmp.eq.f32.partialorder %v1056_v39, 8.507059e+37  ;;  %1098 = vmatpush.msra.mxu3 %v1089_v60  ;;  %v1194_v14 = vld [vmem:[%s431_s26 + $0x8] sm:$0xff]  ;;  %vm1071_vm11 = vcmask 1048320   ;;  %s2721_s26 = smov 96  }
 0x33d   : > { %v1036_v17 = vmul.f32 %v2037_v2, %v1035_v12  ;;  %671 = vst.msk [vmem:[#allocation2] sm:$0xff] %vm557_vm1, %v669_v16  ;;  %v1076_v12 = vld [vmem:[%s2692_s8] sm:$0xff] }
 0x33e   : > { %v897_v19 = vpop.f32.mrf.mxu0 }
 0x33f   : > { %v929_v23 = vmul.f32 %v927_v20, %v897_v19  ;;  %v1037_v25 = vadd.f32 %v2037_v2, %v1036_v17 }
 0x340   : > { %v2039_v27 = vpop.eup %2038 }
 0x341   : > { %v1048_v26 = vmul.f32 %v2039_v27, %v997_v6  ;;  %934 = vrot.lane.b32.xlu0 %v929_v23, %s2702_s15  ;;  %v611_v31 = vpop.xlane.xlu0 %610  ;;  %v1041_v32 = vsel %vm1040_vm12, %v2037_v2, %v1037_v25  ;;  %vm1053_vm14 = vweird.f32 %v2039_v27  ;;  %v1079_v6 = vld [vmem:[%s2692_s8 + $0x18] sm:$0xff]  ;;  %v1119_v23 = vld [vmem:[%s2690_s6] sm:$0xff] }
 0x342   : > { %2040 = vrcp.f32 %v611_v31  ;;  %v1046_v34 = vsel %vm1043_vm13, %v1045_v29, %v1041_v32  ;;  %vm1054_vm3 = vmor %vm1052_vm15, %vm1053_vm14  ;;  %v666_v49 = vand.u32 2147483648, %v611_v31  ;;  %v664_v51 = vand.u32 2147483647, %v611_v31  ;;  %1142 = vmatpush.msrb.mxu0 %v1119_v23  ;;  %v2008_v25 = vld [vmem:[%s2691_s7] ss:$0 sm:$0xff] }
 0x343   : > { %v1049_v33 = vsub.f32 1.0, %v1048_v26  ;;  %v1061_v36 = vmul.f32 %v1046_v34, %v1027_v28  ;;  %vm660_vm6 = vweird.f32 %v611_v31  ;;  %v2009_v32 = vld [vmem:[%s2693_s9] ss:$0 sm:$0xff] }
 0x344   : > { %v667_v53 = vor.u32 1.1754944e-38, %v666_v49  ;;  %vm665_vm8 = vcmp.eq.f32.partialorder %v664_v51, 8.507059e+37 }
 0x345   : > { %v1050_v38 = vmul.f32 %v2039_v27, %v1049_v33  ;;  %1065 = vrot.lane.b32.xlu1 %v1061_v36, %s2704_s17 }
 0x347   : > { %v1051_v40 = vadd.f32 %v2039_v27, %v1050_v38 }
 0x348   : > { %v2041_v41 = vpop.eup %2040 }
 0x349   : > { %v656_v43 = vmul.f32 %v2041_v41, %v611_v31  ;;  %v1055_v44 = vsel %vm1054_vm3, %v2039_v27, %v1051_v40  ;;  %vm661_vm5 = vweird.f32 %v2041_v41  ;;  %1203 = vperm.xlu0 %1991, %v1194_v14   ;;  %v1120_v31 = vld [vmem:[%s2690_s6 + $0x8] sm:$0xff] }
 0x34a   : > { %v1060_v46 = vsel %vm1057_vm4, %v1059_v42, %v1055_v44  ;;  %vm662_vm7 = vmor %vm660_vm6, %vm661_vm5  ;;  %1165 = vmatpush.msrb.mxu1 %v1120_v31 }
 0x34b   : > { %v657_v47 = vsub.f32 1.0, %v656_v43  ;;  %v1062_v48 = vmul.f32 %v1060_v46, %v1030_v45 }
 0x34d   : > { %v658_v50 = vmul.f32 %v2041_v41, %v657_v47  ;;  %1067 = vrot.lane.b32.xlu2 %v1062_v48, %s2704_s17 }
 0x34f   : > { %v659_v52 = vadd.f32 %v2041_v41, %v658_v50 }
 0x351   : > { %v663_v54 = vsel %vm662_vm7, %v2041_v41, %v659_v52 }
 0x352   : > { %v668_v55 = vsel %vm665_vm8, %v667_v53, %v663_v54 }
 0x353   : > { %v670_v56 = vmul.f32 %v668_v55, %v2401_v37  ;;  %v1088_v37 = vld [vmem:[%s2692_s8 + $0x60] sm:$0xff] }
 0x354   : > { %1099 = vmatpush.msra.mxu3 %v1088_v37 }
 0x355   : > { %672 = vst.msk [vmem:[#allocation2 + $0x8] sm:$0xff] %vm557_vm1, %v670_v56  ;;  %1198 = vperm.xlu2 %1992, %v1193_v15  }
 0x356   : > { %1100 = vmatpush.msra.mxu3 %v1087_v61 }
 0x358   : > { %1101 = vmatpush.msra.mxu3 %v1086_v62 }
 0x35a   : > { %1102 = vmatpush.msra.mxu3 %v1085_v63 }
 0x35c   : > { %1103 = vmatpush.msra.mxu3 %v1084_v0 }
 0x35e   : > { %1104 = vmatpush.msra.mxu3 %v1083_v1 }
 0x360   : > { %1105 = vmatpush.msra.mxu3 %v1082_v3 }
 0x362   : > { %1106 = vmatpush.msra.mxu3 %v1081_v4 }
 0x364   : > { %1107 = vmatpush.msra.mxu3 %v1080_v5 }
 0x366   : > { %1108 = vmatpush.msra.mxu3 %v1079_v6 }
 0x368   : > { %1109 = vmatpush.msra.mxu3 %v1078_v7 }
 0x36a   : > { %1110 = vmatpush.msra.mxu3 %v1077_v10 }
 0x36c   : > { %1111 = vmatpush.msra.mxu3 %v1076_v12 }
 0x371   : > { %v800_v57 = vpop.permute.xlu2 %799 }
 0x372   : > { %806 = vst.msk [vmem:[#allocation2] sm:$0xff] %vm805_vm9, %v800_v57 }
 0x390   : > { %v802_v2 = vpop.permute.xlu2 %801 }
 0x391   : > { %807 = vst.msk [vmem:[#allocation2 + $0x8] sm:$0xff] %vm805_vm9, %v802_v2 }
 0x3a7   : > { %v1068_v18 = vpop.permute.xlu2 %1067 }
 0x3ab   : > { %v933_v16 = vpop.permute.xlu0 %932 }
 0x3ac   : > { %939 = vst.msk [vmem:[#allocation2] sm:$0xff] %vm938_vm10, %v933_v16 }
 0x3af   : > { %v1199_v27 = vpop.permute.xlu2 %1198 }
 0x3b0   : > { %v1209_v28 = vmul.f32 %v2008_v25, %v1199_v27 }
 0x3b2   : > { %1211 = vrot.lane.b32.xlu0 %v1209_v28, %s2719_s29  ;;  %v1219_v41 = vmul.f32 %v1209_v28, %v2288_v8 }
 0x3b3   : > { %v935_v17 = vpop.permute.xlu0 %934 }
 0x3b4   : > { %940 = vst.msk [vmem:[#allocation2 + $0x8] sm:$0xff] %vm938_vm10, %v935_v17 }
 0x3b5   : > { %1073 = vst.msk [vmem:[#allocation2 + $0x8] sm:$0xff] %vm1071_vm11, %v1068_v18 }
 0x3b7   : > { %v1066_v19 = vpop.permute.xlu1 %1065 }
 0x3b8   : > { %1072 = vst.msk [vmem:[#allocation2] sm:$0xff] %vm1071_vm11, %v1066_v19 }
 0x3bb   : > { %v1204_v29 = vpop.permute.xlu0 %1203 }
 0x3bc   : > { %v1075_v21 = vld [vmem:[#allocation2 + $0x8] sm:$0xff]  ;;  %v1210_v26 = vmul.f32 %v2008_v25, %v1204_v29 }
 0x3be   : > { %1213 = vrot.lane.b32.xlu1 %v1210_v26, %s2719_s29  ;;  %1217 = vrot.lane.b32.xlu2 %v1210_v26, %s2720_s0  ;;  %v1220_v40 = vmul.f32 %v1210_v26, %v2314_v24 }
 0x3bf   : > { %v1074_v20 = vld [vmem:[#allocation2] sm:$0xff] }
 0x3c0   : > { %1112 = vmatmul.f32.vlgmr.msra.gmra.mxu3 %v1074_v20 }
 0x3c6   : > { %1215 = vrot.lane.b32.xlu2 %v1209_v28, %s2720_s0 }
 0x3c8   : > { %1115 = vmatmul.f32.gmra.mxu3 %v1075_v21 }
 0x418   : > { %v1218_v38 = vpop.permute.xlu2 %1217 }
 0x419   : > { %v1226_v45 = vmul.f32 %v1218_v38, %v2324_v30 }
 0x420   : > { %v1216_v44 = vpop.permute.xlu2 %1215 }
 0x421   : > { %v1225_v49 = vmul.f32 %v1216_v44, %v2298_v11 }
 0x424   : > { %v1212_v39 = vpop.permute.xlu0 %1211 }
 0x425   : > { %v1221_v42 = vmul.f32 %v1212_v39, %v2293_v9 }
 0x427   : > { %v1223_v48 = vadd.f32 %v1221_v42, %v1219_v41 }
 0x429   : > { %v1227_v51 = vadd.f32 %v1225_v49, %v1223_v48 }
 0x430   : > { %v1214_v43 = vpop.permute.xlu1 %1213 }
 0x431   : > { %v1222_v46 = vmul.f32 %v1214_v43, %v2308_v22 }
 0x433   : > { %v1224_v47 = vadd.f32 %v1222_v46, %v1220_v40 }
 0x435   : > { %v1228_v50 = vadd.f32 %v1226_v45, %v1224_v47 }
 0x437   : > { %1901 = vmatpush.xpose.msk.msrb.mxu2 %vm557_vm1, %v1228_v50 }
 0x43b   : > { %1902 = vmatpush.xpose.msk.msrb.mxu2 %vm557_vm1, %v1227_v51 }
 0x443   : > { %v1113_v33 = vpop.f32.mrf.mxu3 }
 0x444   : > { %v1114_v34 = vadd.f32 %v2009_v32, %v1113_v33 }
 0x446   : > { %1897 = vmatmul.msk.f32.vlgmr.msrb.gmra.mxu0 %vm443_vm0, %v1114_v34  ;;  %1899 = vmatmul.msk.f32.vlgmr.msrb.gmra.mxu1 %vm443_vm0, %v1114_v34 }
 0x44b   : > { %v1116_v35 = vpop.f32.mrf.mxu3 }
 0x44c   : > { %v1117_v36 = vadd.f32 %v2009_v32, %v1116_v35 }
 0x44e   : > { %1898 = vmatmul.msk.f32.gmra.mxu0 %vm443_vm0, %v1117_v36  ;;  %1900 = vmatmul.msk.f32.gmra.mxu1 %vm443_vm0, %v1117_v36 }
 0x4c3   : > { %v1144_v52 = vpop.f32.mrf.mxu0  ;;  %v1167_v53 = vpop.f32.mrf.mxu1 }
 0x4c4   : > { %1177 = vrot.lane.b32.xlu0 %v1144_v52, %s2720_s0  ;;  %1173 = vrot.lane.b32.xlu1 %v1144_v52, %s2719_s29  ;;  %v1181_v58 = vmul.f32 %v1144_v52, %v2288_v8 }
 0x4cb   : > { %v1147_v54 = vpop.f32.mrf.mxu0  ;;  %v1170_v55 = vpop.f32.mrf.mxu1 }
 0x4cc   : > { %1302 = vmatpush.msra.mxu0 %v1170_v55  ;;  %1179 = vrot.lane.b32.xlu2 %v1147_v54, %s2720_s0  ;;  %v1182_v2 = vmul.f32 %v1147_v54, %v2314_v24 }
 0x4cd   : > { %1175 = vrot.lane.b32.xlu1 %v1147_v54, %s2719_s29  ;;  %1349 = vrot.lane.b32.xlu0 %v1228_v50, %s2721_s26  ;;  %s1772_s29 = scalar_lea.sflag [#allocation4], %s419_s20 }
 0x4ce   : > { %1303 = vmatpush.msra.mxu0 %v1167_v53 }
 0x4d5   : > { %1481 = vrot.lane.b32.xlu0 %v1227_v51, %s2722_s19  ;;  %1347 = vrot.lane.b32.xlu1 %v1227_v51, %s2721_s26 }
 0x4dd   : > { %1483 = vrot.lane.b32.xlu1 %v1228_v50, %s2722_s19 }
 0x4e5   : > { %1613 = vrot.lane.b32.xlu1 %v1227_v51, %s2723_s16 }
 0x526   : > { %v1180_v63 = vpop.permute.xlu2 %1179 }
 0x527   : > { %v1188_v8 = vmul.f32 %v1180_v63, %v2324_v30  ;;  %v1993_v30 = vpack.i.bf16 %v1167_v53, %v1170_v55 }
 0x536   : > { %v1174_v56 = vpop.permute.xlu1 %1173  ;;  %v1178_v57 = vpop.permute.xlu0 %1177 }
 0x537   : > { %v1183_v59 = vmul.f32 %v1174_v56, %v2293_v9  ;;  %v1187_v37 = vmul.f32 %v1178_v57, %v2298_v11 }
 0x539   : > { %v1185_v60 = vadd.f32 %v1183_v59, %v1181_v58 }
 0x53b   : > { %v1189_v61 = vadd.f32 %v1187_v37, %v1185_v60 }
 0x53d   : > { %v1191_v62 = vmul.f32 0.17677669, %v1189_v61 }
 0x53f   : > { %v1176_v0 = vpop.permute.xlu1 %1175  ;;  %v1350_v1 = vpop.permute.xlu0 %1349  ;;  %1343 = vrot.lane.b32.xlu2 %v1191_v62, %s2721_s26  ;;  %1903 = vmatmul.msk.f32.vlgmr.msrb.gmra.mxu2 %vm557_vm1, %v1191_v62 }
 0x540   : > { %v1184_v3 = vmul.f32 %v1176_v0, %v2308_v22  ;;  %1907 = vmatpush.xpose.msk.msra.mxu1 %vm557_vm1, %v1350_v1 }
 0x542   : > { %v1186_v9 = vadd.f32 %v1184_v3, %v1182_v2 }
 0x544   : > { %v1190_v4 = vadd.f32 %v1188_v8, %v1186_v9 }
 0x546   : > { %v1192_v11 = vmul.f32 0.17677669, %v1190_v4 }
 0x547   : > { %v1348_v5 = vpop.permute.xlu1 %1347  ;;  %1615 = vrot.lane.b32.xlu2 %v1228_v50, %s2723_s16  ;;  %v1482_v22 = vpop.permute.xlu0 %1481 }
 0x548   : > { %1345 = vrot.lane.b32.xlu0 %v1192_v11, %s2721_s26  ;;  %1479 = vrot.lane.b32.xlu1 %v1192_v11, %s2722_s19 }
 0x549   : > { %1904 = vmatmul.msk.f32.gmra.mxu2 %vm557_vm1, %v1192_v11  ;;  %1908 = vmatpush.xpose.msk.msra.mxu1 %vm557_vm1, %v1348_v5 }
 0x54f   : > { %v1484_v24 = vpop.permute.xlu1 %1483  ;;  %1477 = vrot.lane.b32.xlu2 %v1191_v62, %s2722_s19 }
 0x550   : > { %1913 = vmatpush.xpose.msk.msrb.mxu3 %vm557_vm1, %v1484_v24  ;;  %1609 = vrot.lane.b32.xlu0 %v1191_v62, %s2723_s16 }
 0x554   : > { %1914 = vmatpush.xpose.msk.msrb.mxu3 %vm557_vm1, %v1482_v22 }
 0x557   : > { %1611 = vrot.lane.b32.xlu2 %v1192_v11, %s2723_s16  ;;  %v1614_v10 = vpop.permute.xlu1 %1613 }
 0x558   : > { %1994 = vrot.lane.b32.xlu0 %v1993_v30, %s2721_s26 }
 0x599   : > { %v1344_v6 = vpop.permute.xlu2 %1343 }
 0x59a   : > { %1909 = vmatmul.msk.f32.vlgmr.msra.gmra.mxu1 %vm557_vm1, %v1344_v6 }
 0x5a1   : > { %v1616_v7 = vpop.permute.xlu2 %1615 }
 0x5a2   : > { %1919 = vmatpush.xpose.msk.msrb.mxu1 %vm557_vm1, %v1616_v7 }
 0x5a6   : > { %1920 = vmatpush.xpose.msk.msrb.mxu1 %vm557_vm1, %v1614_v10 }
 0x5a9   : > { %v1478_v12 = vpop.permute.xlu2 %1477 }
 0x5aa   : > { %1915 = vmatmul.msk.f32.vlgmr.msrb.gmra.mxu3 %vm557_vm1, %v1478_v12 }
 0x5b1   : > { %v1612_v18 = vpop.permute.xlu2 %1611 }
 0x5ba   : > { %v1480_v13 = vpop.permute.xlu1 %1479  ;;  %v1346_v14 = vpop.permute.xlu0 %1345 }
 0x5bb   : > { %1910 = vmatmul.msk.f32.gmra.mxu1 %vm557_vm1, %v1346_v14  ;;  %1916 = vmatmul.msk.f32.gmra.mxu3 %vm557_vm1, %v1480_v13 }
 0x5c2   : > { %v1610_v15 = vpop.permute.xlu0 %1609  ;;  %v1258_v16 = vpop.f32.mrf.mxu2 }
 0x5c3   : > { %1921 = vmatmul.msk.f32.vlgmr.msrb.gmra.mxu1 %vm557_vm1, %v1610_v15  ;;  %v1264_v17 = vsel %vm593_vm2, %v1258_v16, -inf }
 0x5c4   : > { %1265 = vmax.xlane.f32.xlu1 %v1264_v17 }
 0x5ca   : > { %v1995_v19 = vpop.permute.xlu0 %1994 }
 0x5cb   : > { %v1996_v20 = vunpack.i.l.bf16 %v1995_v19  ;;  %1922 = vmatmul.msk.f32.gmra.mxu1 %vm557_vm1, %v1612_v18  ;;  %v1997_v23 = vunpack.i.h.bf16 %v1995_v19 }
 0x5cc   : > { %v1261_v21 = vpop.f32.mrf.mxu2 }
 0x5cd   : > { %v1267_v25 = vsel %vm593_vm2, %v1261_v21, -inf  ;;  %1428 = vmatpush.msra.mxu2 %v1996_v20 }
 0x5ce   : > { %1268 = vmax.xlane.f32.xlu1 %v1267_v25 }
 0x5cf   : > { %1429 = vmatpush.msra.mxu2 %v1997_v23 }
 0x617   : > { %v1376_v27 = vpop.f32.mrf.mxu1 }
 0x618   : > { %v1382_v28 = vsel %vm593_vm2, %v1376_v27, -inf }
 0x619   : > { %1383 = vmax.xlane.f32.xlu0 %v1382_v28 }
 0x62d   : > { %2004 = vrot.lane.b32.xlu0 %v1993_v30, %s2722_s19  ;;  %v1510_v29 = vpop.f32.mrf.mxu3 }
 0x62e   : > { %v1516_v26 = vsel %vm593_vm2, %v1510_v29, -inf }
 0x62f   : > { %1517 = vmax.xlane.f32.xlu1 %v1516_v26 }
 0x637   : > { %v1266_v31 = vpop.xlane.xlu1 %1265 }
 0x638   : > { %v1270_v32 = vsub.f32 %v1258_v16, %v1266_v31  ;;  %v1379_v33 = vpop.f32.mrf.mxu1 }
 0x639   : > { %v1385_v34 = vsel %vm593_vm2, %v1379_v33, -inf }
 0x63a   : > { %v1272_v35 = vmul.f32 1.442695, %v1270_v32  ;;  %1386 = vmax.xlane.f32.xlu2 %v1385_v34 }
 0x63c   : > { %2042 = vpow2.f32 %v1272_v35 }
 0x63e   : > { %v1513_v46 = vpop.f32.mrf.mxu3 }
 0x63f   : > { %v1519_v47 = vsel %vm593_vm2, %v1513_v46, -inf }
 0x640   : > { %v1642_v36 = vpop.f32.mrf.mxu1 }
 0x641   : > { %v1269_v38 = vpop.xlane.xlu1 %1268  ;;  %v1648_v39 = vsel %vm593_vm2, %v1642_v36, -inf }
 0x642   : > { %v2565_v40 = vpop.eup %2042  ;;  %v1271_v41 = vsub.f32 %v1261_v21, %v1269_v38  ;;  %1649 = vmax.xlane.f32.xlu2 %v1648_v39 }
 0x643   : > { %1905 = vmatmul.msk.f32.vlgmr.msra.gmra.mxu0 %vm593_vm2, %v2565_v40  ;;  %v1276_v17 = vsel %vm593_vm2, %v2565_v40, 0.0 }
 0x644   : > { %v1274_v42 = vmul.f32 1.442695, %v1271_v41 }
 0x646   : > { %2044 = vpow2.f32 %v1274_v42 }
 0x648   : > { %v1645_v43 = vpop.f32.mrf.mxu1  ;;  %1999 = vrot.lane.b32.xlu1 %v1993_v30, %s2723_s16 }
 0x649   : > { %v1651_v44 = vsel %vm593_vm2, %v1645_v43, -inf }
 0x64a   : > { %1652 = vmax.xlane.f32.xlu2 %v1651_v44 }
 0x64c   : > { %v2571_v45 = vpop.eup %2044 }
 0x64d   : > { %1906 = vmatmul.msk.f32.gmra.mxu0 %vm593_vm2, %v2571_v45  ;;  %v1279_v16 = vsel %vm593_vm2, %v2571_v45, 0.0 }
 0x652   : > { %1520 = vmax.xlane.f32.xlu2 %v1519_v47 }
 0x68c   : > { %v1384_v48 = vpop.xlane.xlu0 %1383 }
 0x68d   : > { %v1388_v49 = vsub.f32 %v1376_v27, %v1384_v48 }
 0x68f   : > { %v1390_v50 = vmul.f32 1.442695, %v1388_v49 }
 0x691   : > { %2046 = vpow2.f32 %v1390_v50 }
 0x697   : > { %v2047_v51 = vpop.eup %2046 }
 0x698   : > { %1911 = vmatmul.msk.f32.vlgmr.msra.gmra.mxu2 %vm593_vm2, %v2047_v51  ;;  %v1394_v52 = vsel %vm593_vm2, %v2047_v51, 0.0 }
 0x699   : > { %1395 = vadd.xlane.f32.xlu1 %v1394_v52 }
 0x69f   : > { %v2005_v53 = vpop.permute.xlu0 %2004 }
 0x6a0   : > { %v2006_v54 = vunpack.i.l.bf16 %v2005_v53  ;;  %v2007_v55 = vunpack.i.h.bf16 %v2005_v53 }
 0x6a2   : > { %v1518_v56 = vpop.xlane.xlu1 %1517  ;;  %1560 = vmatpush.msrb.mxu0 %v2006_v54 }
 0x6a3   : > { %v1522_v57 = vsub.f32 %v1510_v29, %v1518_v56 }
 0x6a4   : > { %1561 = vmatpush.msrb.mxu0 %v2007_v55 }
 0x6a5   : > { %v1524_v58 = vmul.f32 1.442695, %v1522_v57 }
 0x6a7   : > { %2048 = vpow2.f32 %v1524_v58 }
 0x6ad   : > { %v2049_v59 = vpop.eup %2048  ;;  %v1387_v60 = vpop.xlane.xlu2 %1386 }
 0x6ae   : > { %v1389_v37 = vsub.f32 %v1379_v33, %v1387_v60  ;;  %1917 = vmatmul.msk.f32.vlgmr.msrb.gmra.mxu0 %vm593_vm2, %v2049_v59  ;;  %v1528_v22 = vsel %vm593_vm2, %v2049_v59, 0.0 }
 0x6b0   : > { %v1392_v61 = vmul.f32 1.442695, %v1389_v37 }
 0x6b2   : > { %2050 = vpow2.f32 %v1392_v61 }
 0x6b5   : > { %v1650_v62 = vpop.xlane.xlu2 %1649 }
 0x6b6   : > { %v1654_v63 = vsub.f32 %v1642_v36, %v1650_v62 }
 0x6b8   : > { %v2051_v0 = vpop.eup %2050  ;;  %v1656_v1 = vmul.f32 1.442695, %v1654_v63 }
 0x6b9   : > { %1912 = vmatmul.msk.f32.gmra.mxu2 %vm593_vm2, %v2051_v0  ;;  %v1397_v2 = vsel %vm593_vm2, %v2051_v0, 0.0 }
 0x6ba   : > { %2052 = vpow2.f32 %v1656_v1  ;;  %1398 = vadd.xlane.f32.xlu2 %v1397_v2  ;;  %v2000_v3 = vpop.permute.xlu1 %1999 }
 0x6bb   : > { %v2001_v8 = vunpack.i.l.bf16 %v2000_v3  ;;  %v2002_v9 = vunpack.i.h.bf16 %v2000_v3 }
 0x6bd   : > { %v1653_v4 = vpop.xlane.xlu2 %1652  ;;  %1692 = vmatpush.msrb.mxu2 %v2001_v8 }
 0x6be   : > { %v1655_v11 = vsub.f32 %v1645_v43, %v1653_v4 }
 0x6bf   : > { %1693 = vmatpush.msrb.mxu2 %v2002_v9 }
 0x6c0   : > { %v2053_v5 = vpop.eup %2052  ;;  %v1658_v24 = vmul.f32 1.442695, %v1655_v11  ;;  %v2592_v38 = vpop.f32.mrf.mxu0 }
 0x6c1   : > { %1923 = vmatmul.msk.f32.vlgmr.msrb.gmra.mxu2 %vm593_vm2, %v2053_v5  ;;  %v1660_v12 = vsel %vm593_vm2, %v2053_v5, 0.0 }
 0x6c2   : > { %2054 = vpow2.f32 %v1658_v24  ;;  %1529 = vadd.xlane.f32.xlu2 %v1528_v22 }
 0x6c5   : > { %v1521_v30 = vpop.xlane.xlu2 %1520 }
 0x6c6   : > { %v1523_v6 = vsub.f32 %v1513_v46, %v1521_v30 }
 0x6c8   : > { %v2055_v7 = vpop.eup %2054  ;;  %v1526_v10 = vmul.f32 1.442695, %v1523_v6 }
 0x6c9   : > { %1924 = vmatmul.msk.f32.gmra.mxu2 %vm593_vm2, %v2055_v7  ;;  %v1663_v14 = vsel %vm593_vm2, %v2055_v7, 0.0 }
 0x6ca   : > { %2056 = vpow2.f32 %v1526_v10  ;;  %1661 = vadd.xlane.f32.xlu2 %v1660_v12  ;;  %v2599_v57 = vpop.f32.mrf.mxu0 }
 0x6d0   : > { %v2057_v13 = vpop.eup %2056 }
 0x6d1   : > { %1918 = vmatmul.msk.f32.gmra.mxu0 %vm593_vm2, %v2057_v13  ;;  %v1531_v15 = vsel %vm593_vm2, %v2057_v13, 0.0 }
 0x6d2   : > { %1664 = vadd.xlane.f32.xlu2 %v1663_v14  ;;  %1532 = vadd.xlane.f32.xlu0 %v1531_v15 }
 0x6da   : > { %1280 = vadd.xlane.f32.xlu2 %v1279_v16 }
 0x6e2   : > { %1277 = vadd.xlane.f32.xlu2 %v1276_v17 }
 0x70c   : > { %v1396_v18 = vpop.xlane.xlu1 %1395 }
 0x70d   : > { %2058 = vrcp.f32 %v1396_v18  ;;  %v1448_v44 = vand.u32 2147483648, %v1396_v18  ;;  %vm1442_vm3 = vweird.f32 %v1396_v18  ;;  %v1446_v47 = vand.u32 2147483647, %v1396_v18 }
 0x70f   : > { %v1449_v52 = vor.u32 1.1754944e-38, %v1448_v44  ;;  %vm1447_vm5 = vcmp.eq.f32.partialorder %v1446_v47, 8.507059e+37 }
 0x713   : > { %v2059_v20 = vpop.eup %2058 }
 0x714   : > { %v1438_v21 = vmul.f32 %v2059_v20, %v1396_v18  ;;  %vm1443_vm13 = vweird.f32 %v2059_v20 }
 0x715   : > { %vm1444_vm4 = vmor %vm1442_vm3, %vm1443_vm13 }
 0x716   : > { %v1439_v25 = vsub.f32 1.0, %v1438_v21 }
 0x718   : > { %v1440_v32 = vmul.f32 %v2059_v20, %v1439_v25 }
 0x71a   : > { %v1441_v40 = vadd.f32 %v2059_v20, %v1440_v32 }
 0x71b   : > { %v1431_v29 = vpop.f32.mrf.mxu2 }
 0x71c   : > { %v1445_v50 = vsel %vm1444_vm4, %v2059_v20, %v1441_v40 }
 0x71d   : > { %v1450_v53 = vsel %vm1447_vm5, %v1449_v52, %v1445_v50 }
 0x71e   : > { %v1465_v60 = vmul.f32 %v1450_v53, %v1431_v29 }
 0x72b   : > { %v1563_v4 = vpop.f32.mrf.mxu0 }
 0x72d   : > { %v1399_v19 = vpop.xlane.xlu2 %1398 }
 0x72e   : > { %2060 = vrcp.f32 %v1399_v19  ;;  %v1462_v31 = vand.u32 2147483648, %v1399_v19  ;;  %v1460_v34 = vand.u32 2147483647, %v1399_v19  ;;  %vm1456_vm12 = vweird.f32 %v1399_v19 }
 0x730   : > { %v1463_v39 = vor.u32 1.1754944e-38, %v1462_v31  ;;  %vm1461_vm15 = vcmp.eq.f32.partialorder %v1460_v34, 8.507059e+37  ;;  %v1744_v31 = vld [vmem:[%s2695_s11] sm:$0xff] }
 0x734   : > { %v2061_v23 = vpop.eup %2060 }
 0x735   : > { %v1452_v27 = vmul.f32 %v2061_v23, %v1399_v19  ;;  %v1530_v28 = vpop.xlane.xlu2 %1529  ;;  %vm1457_vm0 = vweird.f32 %v2061_v23 }
 0x736   : > { %2062 = vrcp.f32 %v1530_v28  ;;  %vm1458_vm14 = vmor %vm1456_vm12, %vm1457_vm0  ;;  %v1580_v58 = vand.u32 2147483648, %v1530_v28  ;;  %vm1574_vm7 = vweird.f32 %v1530_v28  ;;  %v1578_v37 = vand.u32 2147483647, %v1530_v28 }
 0x737   : > { %v1453_v26 = vsub.f32 1.0, %v1452_v27 }
 0x738   : > { %v1581_v62 = vor.u32 1.1754944e-38, %v1580_v58  ;;  %vm1579_vm0 = vcmp.eq.f32.partialorder %v1578_v37, 8.507059e+37 }
 0x739   : > { %v1454_v33 = vmul.f32 %v2061_v23, %v1453_v26 }
 0x73b   : > { %v1455_v35 = vadd.f32 %v2061_v23, %v1454_v33 }
 0x73c   : > { %v2063_v36 = vpop.eup %2062  ;;  %v1434_v45 = vpop.f32.mrf.mxu2 }
 0x73d   : > { %v1570_v41 = vmul.f32 %v2063_v36, %v1530_v28  ;;  %v1459_v42 = vsel %vm1458_vm14, %v2061_v23, %v1455_v35  ;;  %v2594_v43 = vpop.xlane.xlu2 %1661  ;;  %vm1575_vm6 = vweird.f32 %v2063_v36 }
 0x73e   : > { %v1464_v46 = vsel %vm1461_vm15, %v1463_v39, %v1459_v42  ;;  %2064 = vrcp.f32 %v2594_v43  ;;  %vm1576_vm8 = vmor %vm1574_vm7, %vm1575_vm6  ;;  %v1712_v32 = vand.u32 2147483648, %v2594_v43  ;;  %v1710_v39 = vand.u32 2147483647, %v2594_v43 }
 0x73f   : > { %v1571_v48 = vsub.f32 1.0, %v1570_v41  ;;  %v1466_v49 = vmul.f32 %v1464_v46, %v1434_v45 }
 0x740   : > { %v1713_v46 = vor.u32 1.1754944e-38, %v1712_v32 }
 0x741   : > { %v1572_v51 = vmul.f32 %v2063_v36, %v1571_v48  ;;  %1471 = vrot.lane.b32.xlu0 %v1466_v49, %s2723_s16 }
 0x743   : > { %v1573_v56 = vadd.f32 %v2063_v36, %v1572_v51 }
 0x744   : > { %v2601_v59 = vpop.eup %2064  ;;  %v2606_v1 = vpop.f32.mrf.mxu2 }
 0x745   : > { %v1665_v54 = vpop.xlane.xlu2 %1664  ;;  %v1533_v55 = vpop.xlane.xlu0 %1532  ;;  %v1577_v61 = vsel %vm1576_vm8, %v2063_v36, %v1573_v56  ;;  %v1702_v63 = vmul.f32 %v2601_v59, %v2594_v43  ;;  %vm1707_vm14 = vweird.f32 %v2601_v59  ;;  %vm1706_vm8 = vweird.f32 %v2594_v43 }
 0x746   : > { %2066 = vrcp.f32 %v1665_v54  ;;  %v1582_v2 = vsel %vm1579_vm0, %v1581_v62, %v1577_v61  ;;  %v1724_v6 = vand.u32 2147483647, %v1665_v54  ;;  %v1726_v7 = vand.u32 2147483648, %v1665_v54  ;;  %vm2625_vm0 = vmor %vm1706_vm8, %vm1707_vm14 }
 0x747   : > { %2068 = vrcp.f32 %v1533_v55  ;;  %v1703_v11 = vsub.f32 1.0, %v1702_v63  ;;  %v1597_v22 = vmul.f32 %v1582_v2, %v1563_v4  ;;  %v1592_v12 = vand.u32 2147483647, %v1533_v55 }
 0x748   : > { %v1594_v13 = vand.u32 2147483648, %v1533_v55  ;;  %vm1720_vm15 = vweird.f32 %v1665_v54  ;;  %vm1725_vm4 = vcmp.eq.f32.partialorder %v1724_v6, 8.507059e+37  ;;  %v1727_v18 = vor.u32 1.1754944e-38, %v1726_v7 }
 0x749   : > { %1469 = vrot.lane.b32.xlu0 %v1465_v60, %s2723_s16  ;;  %v1704_v14 = vmul.f32 %v2601_v59, %v1703_v11  ;;  %vm1588_vm5 = vweird.f32 %v1533_v55  ;;  %vm1593_vm7 = vcmp.eq.f32.partialorder %v1592_v12, 8.507059e+37  ;;  %vm1711_vm14 = vcmp.eq.f32.partialorder %v1710_v39, 8.507059e+37  ;;  %v1743_v11 = vld [vmem:[%s2694_s10] sm:$0xff]  ;;  %s421_s16 = scalar_lea.vmem [#allocation3], %s1862_s2  ;;  %s2094_s2 = scalar_lea.hbm %s2696_s12, 16 }
 0x74a   : > { %v1595_v23 = vor.u32 1.1754944e-38, %v1594_v13  ;;  %s1784_s17 = sshll.u32 %s421_s16, 4  ;;  %s1785_s17 = int_to_ptr.vmem [resolvable:$true] %s1784_s17 }
 0x74b   : > { %v1705_v27 = vadd.f32 %v2601_v59, %v1704_v14 }
 0x74c   : > { %v2067_v0 = vpop.eup %2066  ;;  %v1698_v28 = vpop.f32.mrf.mxu2 }
 0x74d   : > { %v2069_v3 = vpop.eup %2068  ;;  %v1716_v8 = vmul.f32 %v2067_v0, %v1665_v54  ;;  %v2608_v9 = vpop.xlane.xlu2 %1280  ;;  %vm1721_vm12 = vweird.f32 %v2067_v0  ;;  %v1709_v43 = vsel %vm2625_vm0, %v2601_v59, %v1705_v27 }
 0x74e   : > { %v1584_v5 = vmul.f32 %v2069_v3, %v1533_v55  ;;  %2070 = vrcp.f32 %v2608_v9  ;;  %vm1589_vm13 = vweird.f32 %v2069_v3  ;;  %vm1722_vm3 = vmor %vm1720_vm15, %vm1721_vm12  ;;  %v1566_v35 = vpop.f32.mrf.mxu0  ;;  %v1336_v40 = vand.u32 2147483648, %v2608_v9 }
 0x74f   : > { %v1717_v24 = vsub.f32 1.0, %v1716_v8  ;;  %vm1590_vm6 = vmor %vm1588_vm5, %vm1589_vm13  ;;  %v1334_v45 = vand.u32 2147483647, %v2608_v9  ;;  %vm1330_vm13 = vweird.f32 %v2608_v9  ;;  %v1714_v50 = vsel %vm1711_vm14, %v1713_v46, %v1709_v43 }
 0x750   : > { %v1585_v30 = vsub.f32 1.0, %v1584_v5  ;;  %v1337_v49 = vor.u32 1.1754944e-38, %v1336_v40  ;;  %v1729_v56 = vmul.f32 %v1714_v50, %v2606_v1 }
 0x751   : > { %v1718_v10 = vmul.f32 %v2067_v0, %v1717_v24  ;;  %1601 = vrot.lane.b32.xlu0 %v1597_v22, %s2722_s19 }
 0x752   : > { %v1586_v15 = vmul.f32 %v2069_v3, %v1585_v30 }
 0x753   : > { %v1719_v16 = vadd.f32 %v2067_v0, %v1718_v10 }
 0x754   : > { %v2071_v17 = vpop.eup %2070  ;;  %v1587_v19 = vadd.f32 %v2069_v3, %v1586_v15 }
 0x755   : > { %v1723_v20 = vsel %vm1722_vm3, %v2067_v0, %v1719_v16  ;;  %v1326_v21 = vmul.f32 %v2071_v17, %v2608_v9  ;;  %v1278_v25 = vpop.xlane.xlu2 %1277  ;;  %vm1331_vm12 = vweird.f32 %v2071_v17  ;;  %vm1335_vm3 = vcmp.eq.f32.partialorder %v1334_v45, 8.507059e+37 }
 0x756   : > { %v1728_v29 = vsel %vm1725_vm4, %v1727_v18, %v1723_v20  ;;  %v1591_v26 = vsel %vm1590_vm6, %v2069_v3, %v1587_v19  ;;  %2072 = vrcp.f32 %v1278_v25  ;;  %vm1332_vm15 = vmor %vm1330_vm13, %vm1331_vm12  ;;  %v1322_v58 = vand.u32 2147483648, %v1278_v25 }
 0x757   : > { %v1730_v33 = vmul.f32 %v1728_v29, %v1698_v28  ;;  %v1327_v34 = vsub.f32 1.0, %v1326_v21  ;;  %v1596_v36 = vsel %vm1593_vm7, %v1595_v23, %v1591_v26  ;;  %v1320_v60 = vand.u32 2147483647, %v1278_v25 }
 0x758   : > { %v1598_v41 = vmul.f32 %v1596_v36, %v1566_v35  ;;  %vm1316_vm5 = vweird.f32 %v1278_v25  ;;  %v1323_v61 = vor.u32 1.1754944e-38, %v1322_v58 }
 0x759   : > { %v1328_v44 = vmul.f32 %v2071_v17, %v1327_v34  ;;  %1735 = vrot.lane.b32.xlu1 %v1730_v33, %s2721_s26  ;;  %1747 = vperm.xlu0 %1991, %v1744_v31   ;;  %vm1321_vm7 = vcmp.eq.f32.partialorder %v1320_v60, 8.507059e+37 }
 0x75a   : > { %1603 = vrot.lane.b32.xlu2 %v1598_v41, %s2722_s19  ;;  %s1782_s19 = scalar_lea.hbm %s2696_s12, %s1926_s18 }
 0x75b   : > { %v1329_v47 = vadd.f32 %v2071_v17, %v1328_v44  ;;  %s1786_s28 = sshll.u32 %s1782_s19, 4  ;;  %s1787_s28 = int_to_ptr.hbm [resolvable:$true] %s1786_s28 }
 0x75c   : > { %v2073_v48 = vpop.eup %2072  ;;  %s2088_s0 = sshra.s32 %s1787_s28, 4  ;;  %s2089_s0 = int_to_ptr.hbm [resolvable:$true] %s2088_s0 }
 0x75d   : > { %v1333_v51 = vsel %vm1332_vm15, %v2071_v17, %v1329_v47  ;;  %v1312_v52 = vmul.f32 %v2073_v48, %v1278_v25  ;;  %vm1317_vm4 = vweird.f32 %v2073_v48  ;;  %s2090_s1 = scalar_lea.hbm %s2089_s0, 8  ;;  %p2095_p0 = scmp.lt.s32.totalorder %s2089_s0, %s2696_s12 }
 0x75e   : > { %v1338_v53 = vsel %vm1335_vm3, %v1337_v49, %v1333_v51  ;;  %vm1318_vm6 = vmor %vm1316_vm5, %vm1317_vm4  ;;  %p2091_p11 = scmp.ne.s32.totalorder %s2089_s0, %s2090_s1  ;;  %p2096_p1 = scmp.lt.s32.totalorder %s2094_s2, %s2090_s1 }
 0x75f   : > { %v1313_v54 = vsub.f32 1.0, %v1312_v52  ;;  %v1340_v55 = vmul.f32 %v1338_v53, %v2599_v57 }
 0x760   : > { %p2092_p12 = pnand %p2091_p11, %p2247_p5  ;;  %p2097_p2 = por %p2096_p1, %p2095_p0 }
 0x761   : > { %v1314_v59 = vmul.f32 %v2073_v48, %v1313_v54  ;;  %1342 = vst.msk [vmem:[#allocation2 + $0x8] sm:$0xff] %vm557_vm1, %v1340_v55 }
 0x762   : > { %1733 = vrot.lane.b32.xlu2 %v1729_v56, %s2721_s26  ;;  %p2093_p13 = pneg %p2092_p12 }
 0x763   : > { %v1315_v37 = vadd.f32 %v2073_v48, %v1314_v59 }
 0x764   : > { %p2098_p3 = pnand %p2097_p2, %p2093_p13 }
 0x765   : > { %v1319_v62 = vsel %vm1318_vm6, %v2073_v48, %v1315_v37 }
 0x766   : > { %v1324_v63 = vsel %vm1321_vm7, %v1323_v61, %v1319_v62 }
 0x767   : > { %v1339_v0 = vmul.f32 %v1324_v63, %v2592_v38 }
 0x769   : > { %1341 = vst.msk [vmem:[#allocation2] sm:$0xff] %vm557_vm1, %v1339_v0 }
 0x7b3   : > { %v1472_v57 = vpop.permute.xlu0 %1471 }
 0x7b4   : > { %v1604_v1 = vpop.permute.xlu2 %1603  ;;  %1476 = vst.msk [vmem:[#allocation2 + $0x8] sm:$0xff] %vm805_vm9, %v1472_v57 }
 0x7b5   : > { %1608 = vst.msk [vmem:[#allocation2 + $0x8] sm:$0xff] %vm938_vm10, %v1604_v1 }
 0x7bb   : > { %v1470_v2 = vpop.permute.xlu0 %1469 }
 0x7bc   : > { %1475 = vst.msk [vmem:[#allocation2] sm:$0xff] %vm805_vm9, %v1470_v2  ;;  %v1734_v8 = vpop.permute.xlu2 %1733 }
 0x7c3   : > { %v1602_v3 = vpop.permute.xlu0 %1601 }
 0x7c4   : > { %1607 = vst.msk [vmem:[#allocation2] sm:$0xff] %vm938_vm10, %v1602_v3 }
 0x7c5   : > { %1739 = vst.msk [vmem:[#allocation2] sm:$0xff] %vm1071_vm11, %v1734_v8 }
 0x7cb   : > { %v1736_v38 = vpop.permute.xlu1 %1735  ;;  %v1748_v5 = vpop.permute.xlu0 %1747 }
 0x7cc   : > { %1740 = vst.msk [vmem:[#allocation2 + $0x8] sm:$0xff] %vm1071_vm11, %v1736_v38  ;;  %v1741_v4 = vld [vmem:[#allocation2] sm:$0xff] }
 0x7d3   : > { %v1742_v9 = vld [vmem:[#allocation2 + $0x8] sm:$0xff] }
 0x7d4   : > { %1764 = vmatpush.xpose.msra.mxu3 %v1742_v9 }
 0x7d8   : > { %1765 = vmatpush.xpose.msra.mxu3 %v1741_v4 }
 0x7db   : > { %1766 = vmatmul.f32.vlgmr.msra.gmra.mxu3 %v1743_v11 }
 0x85e   : > { %v1767_v24 = vpop.f32.mrf.mxu3 }
 0x85f   : > { %v1768_v22 = vadd.f32 %v1767_v24, %v1748_v5 }
 0x861   : > { %1770 = vst.msk [vmem:[%s421_s16] sm:$0xff] %vm593_vm2, %v1768_v22 }
 0x862   : > { %2101 = shalt.err (!%p2098_p3)
}
 0x863   : > { %1931 = dma.vmem_to_hbm [thread:$0]  (%p2247_p5), %s1785_s17, 128, %s1787_s28, %s1772_s29  }
 0x864 PF: > { %p1937_p4 = scmp.ge.s32.totalorder %s2136_s24, 2  ;;  %s1798_s20 = sand.u32 1, %s2124_s21  }
 0x865   : > { %s1799_s19 = scalar_lea.sflag [#allocation4], %s1798_s20 }
 0x866   : > { %p1934_p7 = pnand %p1937_p4, %p2251_p6 }
 0x868   : > { %p1935_p8 = pneg %p1934_p7 }
 0x86a   : > { %2119 = dma.done.wait (%p1935_p8), %s1799_s19, 128  }
 0x86b   : > { %2121 = vsyncadd (%p1935_p8), %s1799_s19, 4294967168  ;;  %p22_p9 = scmp.ge.s32.totalorder %s2234_s27, 4   ;;  %s2726_s21 = smov %s2128_s22 }
 0x86c   : > { %s2727_s22 = smov %s2132_s23  ;;  %s2728_s23 = smov %s2245_s30 }
 0x86d   : > { %s2729_s24 = smov %s2234_s27  ;;  %24 = sbr.rel (!%p22_p9) target bundleno = 7 (0x7), region = 106 }
 0x872   :  { %1805 = vsyncpa [#allocation4], 1 }
 0x873   :  { %1807 = vsyncpa [#allocation4 + $0x1], 1 }

</bundles_post_ra>
